<compile_context>
chip_gen: v6e
topology: v6e:2x2x1
jax: 0.10.0
libtpu: 0.0.40
codegen_flags: <defaults>
</compile_context>

<pallas_src>
import functools
import re

import numpy as np
import jax
import jax.numpy as jnp
from jax.experimental import pallas as pl
from jax.experimental.pallas import tpu as pltpu

EMB_DIM = 128


def _round_up(x, m):
    return ((x + m - 1) // m) * m


def _tpu_generation():
    """Best-effort TPU generation (5, 6, 7, ...) from device_kind; 0 if unknown."""
    try:
        kind = jax.devices()[0].device_kind.lower()
    except Exception:
        return 0
    m = re.search(r"(\d+)", kind)
    return int(m.group(1)) if m else 0


def _vmem_capacity_bytes(gen):
    try:
        cap = getattr(pltpu.get_tpu_info(), "vmem_capacity_bytes", None)
        if cap:
            return int(cap)
    except Exception:
        pass
    return (64 << 20) if gen >= 7 else (128 << 20)


def micron_kernel(idx_ref, diag_emb_ref, proc_emb_ref,
                  w1_ref, b1_ref, w2_ref, b2_ref, w3_ref, b3_ref,
                  out_ref, *, num_diag, counts_dtype, vocab_chunk):
    t = out_ref.shape[0]                       # TILE_N (static, multiple of 8)
    two_t = 2 * t
    w_idx = idx_ref.shape[2]

    # Packed indices: slab 0 = [diag | proc] (current), slab 1 = previous visit.
    # Stacking current+previous rows doubles the MXU M dim for every matmul.
    idx = idx_ref[...].reshape(two_t, w_idx)
    diag_all = idx[:, :num_diag]               # (2T, Cd)
    proc_all = idx[:, num_diag:]               # (2T, Cp)

    def emb_sum(codes, emb_ref):
        # Multiplicity-counts @ embedding table, vocab-chunked so the live
        # (2T, Vchunk) counts intermediate stays at a few MB regardless of V.
        rows, c = codes.shape
        v = emb_ref.shape[0]
        acc = jnp.zeros((rows, EMB_DIM), jnp.float32)
        for v0 in range(0, v, vocab_chunk):
            vc = min(vocab_chunk, v - v0)
            lane = jax.lax.broadcasted_iota(jnp.int32, (rows, vc), 1) + v0
            cnt = jnp.zeros((rows, vc), counts_dtype)
            for j in range(c):                 # C is 6-8: unrolled straight-line code
                cnt = cnt + (codes[:, j:j + 1] == lane).astype(counts_dtype)
            acc = acc + jnp.dot(cnt.astype(jnp.float32),
                                emb_ref[pl.ds(v0, vc), :],
                                preferred_element_type=jnp.float32)
        return acc

    emb_d = emb_sum(diag_all, diag_emb_ref)    # (2T, 128)
    emb_p = emb_sum(proc_all, proc_emb_ref)    # (2T, 128)

    # health_net (linear_1; Dropout eval = identity): one K=256 dot fills the
    # 256-deep MXU on v6e/v7x (v5e splits K internally at equal cost).
    health = (jnp.dot(jnp.concatenate([emb_d, emb_p], axis=1), w1_ref[...],
                      preferred_element_type=jnp.float32)
              + b1_ref[...])                   # (2T, 128)

    # prescription_net: Linear(256->256) -> ReLU -> Linear(256->med_pad) -> Sigmoid
    rep = jnp.concatenate([health[:t, :], health[t:, :]], axis=1)          # (T, 256)
    pre = jnp.dot(rep, w2_ref[...], preferred_element_type=jnp.float32) + b2_ref[...]
    h = jnp.maximum(pre, 0.0)
    logits = jnp.dot(h, w3_ref[...], preferred_element_type=jnp.float32) + b3_ref[...]
    out_ref[...] = jax.nn.sigmoid(logits)      # (T, med_pad), lane-dense


def luke_micron_ablation(diag_idx, proc_idx, prev_diag_idx, prev_proc_idx, params,
                         tile_n=None):
    n, cd = diag_idx.shape
    cp = proc_idx.shape[1]
    med_len = params["b3"].shape[-1]
    gen = _tpu_generation()

    # Tile selection: large tiles on 128 MiB-VMEM chips, 256 on v7x (64 MiB),
    # and at least 2 grid steps on v7x so both TensorCores get work.
    if tile_n is None:
        tile_n = 256 if gen >= 7 else 512
    tile_n = min(tile_n, _round_up(max(n, 1), 8))
    if gen >= 7 and _round_up(n, 8) >= 16:
        tile_n = min(tile_n, _round_up(_round_up(n, 8) // 2, 8))
    n_pad = _round_up(n, tile_n)
    med_pad = _round_up(med_len, 128)          # lane-dense output / w3 columns

    # Pack the four thin int32 index inputs into one (2, n_pad, cd+cp) array.
    # Padded rows use valid index 0 and are sliced away after the kernel.
    def pad_rows(a):
        return a if n_pad == n else jnp.pad(a, ((0, n_pad - n), (0, 0)))

    cur = jnp.concatenate([pad_rows(diag_idx), pad_rows(proc_idx)], axis=1)
    prev = jnp.concatenate([pad_rows(prev_diag_idx), pad_rows(prev_proc_idx)], axis=1)
    idx_all = jnp.stack([cur, prev], axis=0).astype(jnp.int32)   # (2, n_pad, cd+cp)
    w_idx = cd + cp

    w3 = jnp.pad(params["w3"], ((0, 0), (0, med_pad - med_len)))
    b3 = jnp.pad(params["b3"], ((0, 0), (0, med_pad - med_len)))
    diag_emb, proc_emb = params["diag_emb"], params["proc_emb"]
    vd, vp = diag_emb.shape[0], proc_emb.shape[0]

    counts_dtype = jnp.bfloat16 if gen >= 6 else jnp.float32     # counts <= C, exact in bf16
    vocab_chunk = 512

    kernel = functools.partial(micron_kernel, num_diag=cd,
                               counts_dtype=counts_dtype, vocab_chunk=vocab_chunk)

    # VMEM budget: single-buffered residents + double-buffered idx/out tiles
    # + live counts-chunk / activation intermediates, with 2x headroom,
    # capped at ~75% of the chip's physical per-core VMEM.
    resident_bytes = 4 * (vd * EMB_DIM + vp * EMB_DIM
                          + 2 * EMB_DIM * EMB_DIM + EMB_DIM
                          + 2 * EMB_DIM * 256 + 256
                          + 256 * med_pad + med_pad)
    stream_bytes = 2 * 4 * tile_n * (2 * w_idx + med_pad)
    live_bytes = 4 * 2 * tile_n * (min(vocab_chunk, max(vd, vp)) + 4 * 256)
    cap = int(0.75 * _vmem_capacity_bytes(gen))
    vmem_limit = int(min(cap, max(32 << 20,
                                  2 * (resident_bytes + stream_bytes + live_bytes))))

    def run(single_buffer_residents):
        def resident(shape):
            idx_map = lambda i, _z=(0,) * len(shape): _z
            if single_buffer_residents:
                return pl.BlockSpec(shape, idx_map, pipeline_mode=pl.Buffered(1))
            return pl.BlockSpec(shape, idx_map)

        in_specs = [
            pl.BlockSpec((2, tile_n, w_idx), lambda i: (0, i, 0)),
            resident((vd, EMB_DIM)), resident((vp, EMB_DIM)),
            resident((2 * EMB_DIM, EMB_DIM)), resident((1, EMB_DIM)),
            resident((2 * EMB_DIM, 256)), resident((1, 256)),
            resident((256, med_pad)), resident((1, med_pad)),
        ]
        out_specs = pl.BlockSpec((tile_n, med_pad), lambda i: (i, 0))

        return pl.pallas_call(
            kernel,
            out_shape=jax.ShapeDtypeStruct((n_pad, med_pad), jnp.float32),
            grid=(n_pad // tile_n,),
            in_specs=in_specs,
            out_specs=out_specs,
            compiler_params=pltpu.CompilerParams(
                dimension_semantics=("parallel",),
                vmem_limit_bytes=vmem_limit),
        )(idx_all, diag_emb, proc_emb,
          params["w1"], params["b1"], params["w2"], params["b2"], w3, b3)

    try:
        out = run(True)
    except Exception:
        # Robustness fallback: identical math with default (double-buffered) specs.
        out = run(False)

    return out[:n, :med_len]


def init_params(key, diag_len, proc_len, med_len):
    ks = jax.random.split(key, 8)

    def linear(kw, kb, fan_in, fan_out):
        bound = 1.0 / np.sqrt(fan_in)
        w = jax.random.uniform(kw, (fan_in, fan_out), jnp.float32, -bound, bound)  # [in, out]
        b = jax.random.uniform(kb, (1, fan_out), jnp.float32, -bound, bound)
        return w, b

    diag_emb = jax.random.normal(ks[0], (diag_len, EMB_DIM), jnp.float32)
    proc_emb = jax.random.normal(ks[1], (proc_len, EMB_DIM), jnp.float32)
    w1, b1 = linear(ks[2], ks[3], 2 * EMB_DIM, EMB_DIM)        # linear_1: 256 -> 128
    w2, b2 = linear(ks[4], ks[5], 2 * EMB_DIM, 256)            # linear_2: 256 -> 256
    w3, b3 = linear(ks[6], ks[7], 256, med_len)                # linear_3: 256 -> med_len
    return dict(diag_emb=diag_emb, proc_emb=proc_emb,
                w1=w1, b1=b1, w2=w2, b2=b2, w3=w3, b3=b3)


def reference(diag_idx, proc_idx, prev_diag_idx, prev_proc_idx, p):
    def emb_sum(idx, emb):
        return jnp.take(emb, idx, axis=0).sum(axis=1)

    e_d = emb_sum(diag_idx, p["diag_emb"])
    e_p = emb_sum(proc_idx, p["proc_emb"])
    pe_d = emb_sum(prev_diag_idx, p["diag_emb"])
    pe_p = emb_sum(prev_proc_idx, p["proc_emb"])

    def health(ed, ep):
        return jnp.concatenate([ed, ep], axis=1) @ p["w1"] + p["b1"]

    rep = jnp.concatenate([health(e_d, e_p), health(pe_d, pe_p)], axis=1)
    h = jnp.maximum(rep @ p["w2"] + p["b2"], 0.0)
    return jax.nn.sigmoid(h @ p["w3"] + p["b3"])


if __name__ == "__main__":
    # Small, deterministic configuration.
    diag_len, proc_len, med_len = 64, 48, 40
    num_visits, diag_codes_per_visit, proc_codes_per_visit = 4, 8, 6

    root = jax.random.PRNGKey(0)
    k_params, k_d, k_p, k_pd, k_pp = jax.random.split(root, 5)

    params = init_params(k_params, diag_len, proc_len, med_len)

    diag_idx = jax.random.randint(k_d, (num_visits, diag_codes_per_visit), 0, diag_len, jnp.int32)
    proc_idx = jax.random.randint(k_p, (num_visits, proc_codes_per_visit), 0, proc_len, jnp.int32)
    prev_diag_idx = jax.random.randint(k_pd, (num_visits, diag_codes_per_visit), 0, diag_len, jnp.int32)
    prev_proc_idx = jax.random.randint(k_pp, (num_visits, proc_codes_per_visit), 0, proc_len, jnp.int32)

    out = luke_micron_ablation(diag_idx, proc_idx, prev_diag_idx, prev_proc_idx, params)
    out = jax.block_until_ready(out)

    ref = jax.block_until_ready(
        reference(diag_idx, proc_idx, prev_diag_idx, prev_proc_idx, params))
    np.testing.assert_allclose(np.asarray(out), np.asarray(ref), rtol=1e-5, atol=1e-5)

    print("KERNEL_OK")
</pallas_src>

<mosaic_0001>
module attributes {stable_mosaic.version = 11 : i64} {
  func.func @micron_kernel(%arg0: i32, %arg1: memref<2x8x14xi32, #tpu.memory_space<vmem>>, %arg2: memref<64x128xf32, #tpu.memory_space<vmem>>, %arg3: memref<48x128xf32, #tpu.memory_space<vmem>>, %arg4: memref<256x128xf32, #tpu.memory_space<vmem>>, %arg5: memref<1x128xf32, #tpu.memory_space<vmem>>, %arg6: memref<256x256xf32, #tpu.memory_space<vmem>>, %arg7: memref<1x256xf32, #tpu.memory_space<vmem>>, %arg8: memref<256x128xf32, #tpu.memory_space<vmem>>, %arg9: memref<1x128xf32, #tpu.memory_space<vmem>>, %arg10: memref<8x128xf32, #tpu.memory_space<vmem>>) attributes {dimension_semantics = [#tpu.dimension_semantics<parallel>], iteration_bounds = array<i64: 1>, scalar_prefetch = 0 : i64, scratch_operands = 0 : i64, tpu.core_type = #tpu.core_type<tc>, window_params = [{transform_indices = @transform_0, window_bounds = array<i64: 2, 8, 14>}, {pipeline_mode = #tpu.pipeline_mode<synchronous>, transform_indices = @transform_1, window_bounds = array<i64: 64, 128>}, {pipeline_mode = #tpu.pipeline_mode<synchronous>, transform_indices = @transform_2, window_bounds = array<i64: 48, 128>}, {pipeline_mode = #tpu.pipeline_mode<synchronous>, transform_indices = @transform_3, window_bounds = array<i64: 256, 128>}, {pipeline_mode = #tpu.pipeline_mode<synchronous>, transform_indices = @transform_4, window_bounds = array<i64: 1, 128>}, {pipeline_mode = #tpu.pipeline_mode<synchronous>, transform_indices = @transform_5, window_bounds = array<i64: 256, 256>}, {pipeline_mode = #tpu.pipeline_mode<synchronous>, transform_indices = @transform_6, window_bounds = array<i64: 1, 256>}, {pipeline_mode = #tpu.pipeline_mode<synchronous>, transform_indices = @transform_7, window_bounds = array<i64: 256, 128>}, {pipeline_mode = #tpu.pipeline_mode<synchronous>, transform_indices = @transform_8, window_bounds = array<i64: 1, 128>}, {transform_indices = @transform_9, window_bounds = array<i64: 8, 128>}]} {
    %c0 = arith.constant 0 : index
    %c0_0 = arith.constant 0 : index
    %c0_1 = arith.constant 0 : index
    %0 = vector.load %arg1[%c0, %c0_0, %c0_1] : memref<2x8x14xi32, #tpu.memory_space<vmem>>, vector<2x8x14xi32>
    %1 = vector.shape_cast %0 : vector<2x8x14xi32> to vector<16x14xi32>
    %2 = vector.extract_strided_slice %1 {offsets = [0, 0], sizes = [16, 8], strides = [1, 1]} : vector<16x14xi32> to vector<16x8xi32>
    %3 = vector.extract_strided_slice %1 {offsets = [0, 8], sizes = [16, 6], strides = [1, 1]} : vector<16x14xi32> to vector<16x6xi32>
    %cst = arith.constant 0.000000e+00 : f32
    %4 = vector.broadcast %cst : f32 to vector<16x128xf32>
    %5 = tpu.iota {dimensions = array<i32: 1>} : vector<16x64xi32>
    %c0_i32 = arith.constant 0 : i32
    %6 = vector.broadcast %c0_i32 : i32 to vector<16x64xi32>
    %7 = arith.addi %5, %6 : vector<16x64xi32>
    %cst_2 = arith.constant 0.000000e+00 : f32
    %8 = vector.broadcast %cst_2 : f32 to vector<16x64xf32>
    %9 = vector.extract_strided_slice %2 {offsets = [0, 0], sizes = [16, 1], strides = [1, 1]} : vector<16x8xi32> to vector<16x1xi32>
    %10 = vector.broadcast %9 : vector<16x1xi32> to vector<16x64xi32>
    %11 = arith.cmpi eq, %10, %7 : vector<16x64xi32>
    %12 = arith.extui %11 : vector<16x64xi1> to vector<16x64xi32>
    %13 = arith.sitofp %12 : vector<16x64xi32> to vector<16x64xf32>
    %14 = arith.addf %8, %13 : vector<16x64xf32>
    %15 = vector.extract_strided_slice %2 {offsets = [0, 1], sizes = [16, 1], strides = [1, 1]} : vector<16x8xi32> to vector<16x1xi32>
    %16 = vector.broadcast %15 : vector<16x1xi32> to vector<16x64xi32>
    %17 = arith.cmpi eq, %16, %7 : vector<16x64xi32>
    %18 = arith.extui %17 : vector<16x64xi1> to vector<16x64xi32>
    %19 = arith.sitofp %18 : vector<16x64xi32> to vector<16x64xf32>
    %20 = arith.addf %14, %19 : vector<16x64xf32>
    %21 = vector.extract_strided_slice %2 {offsets = [0, 2], sizes = [16, 1], strides = [1, 1]} : vector<16x8xi32> to vector<16x1xi32>
    %22 = vector.broadcast %21 : vector<16x1xi32> to vector<16x64xi32>
    %23 = arith.cmpi eq, %22, %7 : vector<16x64xi32>
    %24 = arith.extui %23 : vector<16x64xi1> to vector<16x64xi32>
    %25 = arith.sitofp %24 : vector<16x64xi32> to vector<16x64xf32>
    %26 = arith.addf %20, %25 : vector<16x64xf32>
    %27 = vector.extract_strided_slice %2 {offsets = [0, 3], sizes = [16, 1], strides = [1, 1]} : vector<16x8xi32> to vector<16x1xi32>
    %28 = vector.broadcast %27 : vector<16x1xi32> to vector<16x64xi32>
    %29 = arith.cmpi eq, %28, %7 : vector<16x64xi32>
    %30 = arith.extui %29 : vector<16x64xi1> to vector<16x64xi32>
    %31 = arith.sitofp %30 : vector<16x64xi32> to vector<16x64xf32>
    %32 = arith.addf %26, %31 : vector<16x64xf32>
    %33 = vector.extract_strided_slice %2 {offsets = [0, 4], sizes = [16, 1], strides = [1, 1]} : vector<16x8xi32> to vector<16x1xi32>
    %34 = vector.broadcast %33 : vector<16x1xi32> to vector<16x64xi32>
    %35 = arith.cmpi eq, %34, %7 : vector<16x64xi32>
    %36 = arith.extui %35 : vector<16x64xi1> to vector<16x64xi32>
    %37 = arith.sitofp %36 : vector<16x64xi32> to vector<16x64xf32>
    %38 = arith.addf %32, %37 : vector<16x64xf32>
    %39 = vector.extract_strided_slice %2 {offsets = [0, 5], sizes = [16, 1], strides = [1, 1]} : vector<16x8xi32> to vector<16x1xi32>
    %40 = vector.broadcast %39 : vector<16x1xi32> to vector<16x64xi32>
    %41 = arith.cmpi eq, %40, %7 : vector<16x64xi32>
    %42 = arith.extui %41 : vector<16x64xi1> to vector<16x64xi32>
    %43 = arith.sitofp %42 : vector<16x64xi32> to vector<16x64xf32>
    %44 = arith.addf %38, %43 : vector<16x64xf32>
    %45 = vector.extract_strided_slice %2 {offsets = [0, 6], sizes = [16, 1], strides = [1, 1]} : vector<16x8xi32> to vector<16x1xi32>
    %46 = vector.broadcast %45 : vector<16x1xi32> to vector<16x64xi32>
    %47 = arith.cmpi eq, %46, %7 : vector<16x64xi32>
    %48 = arith.extui %47 : vector<16x64xi1> to vector<16x64xi32>
    %49 = arith.sitofp %48 : vector<16x64xi32> to vector<16x64xf32>
    %50 = arith.addf %44, %49 : vector<16x64xf32>
    %51 = vector.extract_strided_slice %2 {offsets = [0, 7], sizes = [16, 1], strides = [1, 1]} : vector<16x8xi32> to vector<16x1xi32>
    %52 = vector.broadcast %51 : vector<16x1xi32> to vector<16x64xi32>
    %53 = arith.cmpi eq, %52, %7 : vector<16x64xi32>
    %54 = arith.extui %53 : vector<16x64xi1> to vector<16x64xi32>
    %55 = arith.sitofp %54 : vector<16x64xi32> to vector<16x64xf32>
    %56 = arith.addf %50, %55 : vector<16x64xf32>
    %c0_3 = arith.constant 0 : index
    %c0_4 = arith.constant 0 : index
    %57 = vector.load %arg2[%c0_3, %c0_4] : memref<64x128xf32, #tpu.memory_space<vmem>>, vector<64x128xf32>
    %cst_5 = arith.constant dense<0.000000e+00> : vector<16x128xf32>
    %58 = tpu.matmul %56, %57, %cst_5 {dimension_numbers = #tpu.dot_dimension_numbers<[1], [0], [0], [1], [0, 0, 1, 1], [], []>} : vector<16x64xf32>, vector<64x128xf32>, vector<16x128xf32> -> vector<16x128xf32>
    %59 = arith.addf %4, %58 : vector<16x128xf32>
    %cst_6 = arith.constant 0.000000e+00 : f32
    %60 = vector.broadcast %cst_6 : f32 to vector<16x128xf32>
    %61 = tpu.iota {dimensions = array<i32: 1>} : vector<16x48xi32>
    %c0_i32_7 = arith.constant 0 : i32
    %62 = vector.broadcast %c0_i32_7 : i32 to vector<16x48xi32>
    %63 = arith.addi %61, %62 : vector<16x48xi32>
    %cst_8 = arith.constant 0.000000e+00 : f32
    %64 = vector.broadcast %cst_8 : f32 to vector<16x48xf32>
    %65 = vector.extract_strided_slice %3 {offsets = [0, 0], sizes = [16, 1], strides = [1, 1]} : vector<16x6xi32> to vector<16x1xi32>
    %66 = vector.broadcast %65 : vector<16x1xi32> to vector<16x48xi32>
    %67 = arith.cmpi eq, %66, %63 : vector<16x48xi32>
    %68 = arith.extui %67 : vector<16x48xi1> to vector<16x48xi32>
    %69 = arith.sitofp %68 : vector<16x48xi32> to vector<16x48xf32>
    %70 = arith.addf %64, %69 : vector<16x48xf32>
    %71 = vector.extract_strided_slice %3 {offsets = [0, 1], sizes = [16, 1], strides = [1, 1]} : vector<16x6xi32> to vector<16x1xi32>
    %72 = vector.broadcast %71 : vector<16x1xi32> to vector<16x48xi32>
    %73 = arith.cmpi eq, %72, %63 : vector<16x48xi32>
    %74 = arith.extui %73 : vector<16x48xi1> to vector<16x48xi32>
    %75 = arith.sitofp %74 : vector<16x48xi32> to vector<16x48xf32>
    %76 = arith.addf %70, %75 : vector<16x48xf32>
    %77 = vector.extract_strided_slice %3 {offsets = [0, 2], sizes = [16, 1], strides = [1, 1]} : vector<16x6xi32> to vector<16x1xi32>
    %78 = vector.broadcast %77 : vector<16x1xi32> to vector<16x48xi32>
    %79 = arith.cmpi eq, %78, %63 : vector<16x48xi32>
    %80 = arith.extui %79 : vector<16x48xi1> to vector<16x48xi32>
    %81 = arith.sitofp %80 : vector<16x48xi32> to vector<16x48xf32>
    %82 = arith.addf %76, %81 : vector<16x48xf32>
    %83 = vector.extract_strided_slice %3 {offsets = [0, 3], sizes = [16, 1], strides = [1, 1]} : vector<16x6xi32> to vector<16x1xi32>
    %84 = vector.broadcast %83 : vector<16x1xi32> to vector<16x48xi32>
    %85 = arith.cmpi eq, %84, %63 : vector<16x48xi32>
    %86 = arith.extui %85 : vector<16x48xi1> to vector<16x48xi32>
    %87 = arith.sitofp %86 : vector<16x48xi32> to vector<16x48xf32>
    %88 = arith.addf %82, %87 : vector<16x48xf32>
    %89 = vector.extract_strided_slice %3 {offsets = [0, 4], sizes = [16, 1], strides = [1, 1]} : vector<16x6xi32> to vector<16x1xi32>
    %90 = vector.broadcast %89 : vector<16x1xi32> to vector<16x48xi32>
    %91 = arith.cmpi eq, %90, %63 : vector<16x48xi32>
    %92 = arith.extui %91 : vector<16x48xi1> to vector<16x48xi32>
    %93 = arith.sitofp %92 : vector<16x48xi32> to vector<16x48xf32>
    %94 = arith.addf %88, %93 : vector<16x48xf32>
    %95 = vector.extract_strided_slice %3 {offsets = [0, 5], sizes = [16, 1], strides = [1, 1]} : vector<16x6xi32> to vector<16x1xi32>
    %96 = vector.broadcast %95 : vector<16x1xi32> to vector<16x48xi32>
    %97 = arith.cmpi eq, %96, %63 : vector<16x48xi32>
    %98 = arith.extui %97 : vector<16x48xi1> to vector<16x48xi32>
    %99 = arith.sitofp %98 : vector<16x48xi32> to vector<16x48xf32>
    %100 = arith.addf %94, %99 : vector<16x48xf32>
    %c0_9 = arith.constant 0 : index
    %c0_10 = arith.constant 0 : index
    %101 = vector.load %arg3[%c0_9, %c0_10] : memref<48x128xf32, #tpu.memory_space<vmem>>, vector<48x128xf32>
    %cst_11 = arith.constant dense<0.000000e+00> : vector<16x128xf32>
    %102 = tpu.matmul %100, %101, %cst_11 {dimension_numbers = #tpu.dot_dimension_numbers<[1], [0], [0], [1], [0, 0, 1, 1], [], []>} : vector<16x48xf32>, vector<48x128xf32>, vector<16x128xf32> -> vector<16x128xf32>
    %103 = arith.addf %60, %102 : vector<16x128xf32>
    %104 = tpu.concatenate %59, %103 in 1 : vector<16x128xf32>, vector<16x128xf32> -> vector<16x256xf32>
    %c0_12 = arith.constant 0 : index
    %c0_13 = arith.constant 0 : index
    %105 = vector.load %arg4[%c0_12, %c0_13] : memref<256x128xf32, #tpu.memory_space<vmem>>, vector<256x128xf32>
    %cst_14 = arith.constant dense<0.000000e+00> : vector<16x128xf32>
    %106 = tpu.matmul %104, %105, %cst_14 {dimension_numbers = #tpu.dot_dimension_numbers<[1], [0], [0], [1], [0, 0, 1, 1], [], []>} : vector<16x256xf32>, vector<256x128xf32>, vector<16x128xf32> -> vector<16x128xf32>
    %c0_15 = arith.constant 0 : index
    %c0_16 = arith.constant 0 : index
    %107 = vector.load %arg5[%c0_15, %c0_16] : memref<1x128xf32, #tpu.memory_space<vmem>>, vector<1x128xf32>
    %108 = vector.broadcast %107 : vector<1x128xf32> to vector<16x128xf32>
    %109 = arith.addf %106, %108 : vector<16x128xf32>
    %110 = vector.extract_strided_slice %109 {offsets = [0, 0], sizes = [8, 128], strides = [1, 1]} : vector<16x128xf32> to vector<8x128xf32>
    %111 = vector.extract_strided_slice %109 {offsets = [8, 0], sizes = [8, 128], strides = [1, 1]} : vector<16x128xf32> to vector<8x128xf32>
    %112 = tpu.concatenate %110, %111 in 1 : vector<8x128xf32>, vector<8x128xf32> -> vector<8x256xf32>
    %c0_17 = arith.constant 0 : index
    %c0_18 = arith.constant 0 : index
    %113 = vector.load %arg6[%c0_17, %c0_18] : memref<256x256xf32, #tpu.memory_space<vmem>>, vector<256x256xf32>
    %cst_19 = arith.constant dense<0.000000e+00> : vector<8x256xf32>
    %114 = tpu.matmul %112, %113, %cst_19 {dimension_numbers = #tpu.dot_dimension_numbers<[1], [0], [0], [1], [0, 0, 1, 1], [], []>} : vector<8x256xf32>, vector<256x256xf32>, vector<8x256xf32> -> vector<8x256xf32>
    %c0_20 = arith.constant 0 : index
    %c0_21 = arith.constant 0 : index
    %115 = vector.load %arg7[%c0_20, %c0_21] : memref<1x256xf32, #tpu.memory_space<vmem>>, vector<1x256xf32>
    %116 = vector.broadcast %115 : vector<1x256xf32> to vector<8x256xf32>
    %117 = arith.addf %114, %116 : vector<8x256xf32>
    %cst_22 = arith.constant 0.000000e+00 : f32
    %118 = vector.broadcast %cst_22 : f32 to vector<8x256xf32>
    %119 = arith.maximumf %117, %118 : vector<8x256xf32>
    %c0_23 = arith.constant 0 : index
    %c0_24 = arith.constant 0 : index
    %120 = vector.load %arg8[%c0_23, %c0_24] : memref<256x128xf32, #tpu.memory_space<vmem>>, vector<256x128xf32>
    %cst_25 = arith.constant dense<0.000000e+00> : vector<8x128xf32>
    %121 = tpu.matmul %119, %120, %cst_25 {dimension_numbers = #tpu.dot_dimension_numbers<[1], [0], [0], [1], [0, 0, 1, 1], [], []>} : vector<8x256xf32>, vector<256x128xf32>, vector<8x128xf32> -> vector<8x128xf32>
    %c0_26 = arith.constant 0 : index
    %c0_27 = arith.constant 0 : index
    %122 = vector.load %arg9[%c0_26, %c0_27] : memref<1x128xf32, #tpu.memory_space<vmem>>, vector<1x128xf32>
    %123 = vector.broadcast %122 : vector<1x128xf32> to vector<8x128xf32>
    %124 = arith.addf %121, %123 : vector<8x128xf32>
    %125 = arith.negf %124 : vector<8x128xf32>
    %126 = math.exp %125 : vector<8x128xf32>
    %cst_28 = arith.constant 1.000000e+00 : f32
    %127 = vector.broadcast %cst_28 : f32 to vector<8x128xf32>
    %128 = arith.addf %127, %126 : vector<8x128xf32>
    %129 = arith.divf %127, %128 : vector<8x128xf32>
    %c0_29 = arith.constant 0 : index
    %c0_30 = arith.constant 0 : index
    %130 = vector.load %arg10[%c0_29, %c0_30] : memref<8x128xf32, #tpu.memory_space<vmem>>, vector<8x128xf32>
    tpu.vector_store %arg10[%c0_29, %c0_30], %129 {strides = array<i32>} : memref<8x128xf32, #tpu.memory_space<vmem>>, vector<8x128xf32>,
    return
  }
  func.func @transform_0(%arg0: i32) -> (i32, i32, i32) {
    %c0_i32 = arith.constant 0 : i32
    %c0_i32_0 = arith.constant 0 : i32
    %c0_i32_1 = arith.constant 0 : i32
    return %c0_i32, %arg0, %c0_i32_0 : i32, i32, i32
  }
  func.func @transform_1(%arg0: i32) -> (i32, i32) {
    %c0_i32 = arith.constant 0 : i32
    %c0_i32_0 = arith.constant 0 : i32
    %c0_i32_1 = arith.constant 0 : i32
    return %c0_i32, %c0_i32_0 : i32, i32
  }
  func.func @transform_2(%arg0: i32) -> (i32, i32) {
    %c0_i32 = arith.constant 0 : i32
    %c0_i32_0 = arith.constant 0 : i32
    %c0_i32_1 = arith.constant 0 : i32
    return %c0_i32, %c0_i32_0 : i32, i32
  }
  func.func @transform_3(%arg0: i32) -> (i32, i32) {
    %c0_i32 = arith.constant 0 : i32
    %c0_i32_0 = arith.constant 0 : i32
    %c0_i32_1 = arith.constant 0 : i32
    return %c0_i32, %c0_i32_0 : i32, i32
  }
  func.func @transform_4(%arg0: i32) -> (i32, i32) {
    %c0_i32 = arith.constant 0 : i32
    %c0_i32_0 = arith.constant 0 : i32
    %c0_i32_1 = arith.constant 0 : i32
    return %c0_i32, %c0_i32_0 : i32, i32
  }
  func.func @transform_5(%arg0: i32) -> (i32, i32) {
    %c0_i32 = arith.constant 0 : i32
    %c0_i32_0 = arith.constant 0 : i32
    %c0_i32_1 = arith.constant 0 : i32
    return %c0_i32, %c0_i32_0 : i32, i32
  }
  func.func @transform_6(%arg0: i32) -> (i32, i32) {
    %c0_i32 = arith.constant 0 : i32
    %c0_i32_0 = arith.constant 0 : i32
    %c0_i32_1 = arith.constant 0 : i32
    return %c0_i32, %c0_i32_0 : i32, i32
  }
  func.func @transform_7(%arg0: i32) -> (i32, i32) {
    %c0_i32 = arith.constant 0 : i32
    %c0_i32_0 = arith.constant 0 : i32
    %c0_i32_1 = arith.constant 0 : i32
    return %c0_i32, %c0_i32_0 : i32, i32
  }
  func.func @transform_8(%arg0: i32) -> (i32, i32) {
    %c0_i32 = arith.constant 0 : i32
    %c0_i32_0 = arith.constant 0 : i32
    %c0_i32_1 = arith.constant 0 : i32
    return %c0_i32, %c0_i32_0 : i32, i32
  }
  func.func @transform_9(%arg0: i32) -> (i32, i32) {
    %c0_i32 = arith.constant 0 : i32
    %c0_i32_0 = arith.constant 0 : i32
    return %arg0, %c0_i32 : i32, i32
  }
}

module attributes {stable_mosaic.version = 11 : i64} {
  func.func @micron_kernel(%arg0: i32, %arg1: memref<2x8x14xi32, #tpu.memory_space<vmem>>, %arg2: memref<64x128xf32, #tpu.memory_space<vmem>>, %arg3: memref<48x128xf32, #tpu.memory_space<vmem>>, %arg4: memref<256x128xf32, #tpu.memory_space<vmem>>, %arg5: memref<1x128xf32, #tpu.memory_space<vmem>>, %arg6: memref<256x256xf32, #tpu.memory_space<vmem>>, %arg7: memref<1x256xf32, #tpu.memory_space<vmem>>, %arg8: memref<256x128xf32, #tpu.memory_space<vmem>>, %arg9: memref<1x128xf32, #tpu.memory_space<vmem>>, %arg10: memref<8x128xf32, #tpu.memory_space<vmem>>) attributes {dimension_semantics = [#tpu.dimension_semantics<parallel>], iteration_bounds = array<i64: 1>, scalar_prefetch = 0 : i64, scratch_operands = 0 : i64, tpu.core_type = #tpu.core_type<tc>, window_params = [{transform_indices = @transform_0, window_bounds = array<i64: 2, 8, 14>}, {pipeline_mode = #tpu.pipeline_mode<synchronous>, transform_indices = @transform_1, window_bounds = array<i64: 64, 128>}, {pipeline_mode = #tpu.pipeline_mode<synchronous>, transform_indices = @transform_2, window_bounds = array<i64: 48, 128>}, {pipeline_mode = #tpu.pipeline_mode<synchronous>, transform_indices = @transform_3, window_bounds = array<i64: 256, 128>}, {pipeline_mode = #tpu.pipeline_mode<synchronous>, transform_indices = @transform_4, window_bounds = array<i64: 1, 128>}, {pipeline_mode = #tpu.pipeline_mode<synchronous>, transform_indices = @transform_5, window_bounds = array<i64: 256, 256>}, {pipeline_mode = #tpu.pipeline_mode<synchronous>, transform_indices = @transform_6, window_bounds = array<i64: 1, 256>}, {pipeline_mode = #tpu.pipeline_mode<synchronous>, transform_indices = @transform_7, window_bounds = array<i64: 256, 128>}, {pipeline_mode = #tpu.pipeline_mode<synchronous>, transform_indices = @transform_8, window_bounds = array<i64: 1, 128>}, {transform_indices = @transform_9, window_bounds = array<i64: 8, 128>}]} {
    %c0 = arith.constant 0 : index
    %c0_0 = arith.constant 0 : index
    %c0_1 = arith.constant 0 : index
    %0 = vector.load %arg1[%c0, %c0_0, %c0_1] : memref<2x8x14xi32, #tpu.memory_space<vmem>>, vector<2x8x14xi32>
    %1 = vector.shape_cast %0 : vector<2x8x14xi32> to vector<16x14xi32>
    %2 = vector.extract_strided_slice %1 {offsets = [0, 0], sizes = [16, 8], strides = [1, 1]} : vector<16x14xi32> to vector<16x8xi32>
    %3 = vector.extract_strided_slice %1 {offsets = [0, 8], sizes = [16, 6], strides = [1, 1]} : vector<16x14xi32> to vector<16x6xi32>
    %cst = arith.constant 0.000000e+00 : f32
    %4 = vector.broadcast %cst : f32 to vector<16x128xf32>
    %5 = tpu.iota {dimensions = array<i32: 1>} : vector<16x64xi32>
    %c0_i32 = arith.constant 0 : i32
    %6 = vector.broadcast %c0_i32 : i32 to vector<16x64xi32>
    %7 = arith.addi %5, %6 : vector<16x64xi32>
    %cst_2 = arith.constant 0.000000e+00 : f32
    %8 = vector.broadcast %cst_2 : f32 to vector<16x64xf32>
    %9 = vector.extract_strided_slice %2 {offsets = [0, 0], sizes = [16, 1], strides = [1, 1]} : vector<16x8xi32> to vector<16x1xi32>
    %10 = vector.broadcast %9 : vector<16x1xi32> to vector<16x64xi32>
    %11 = arith.cmpi eq, %10, %7 : vector<16x64xi32>
    %12 = arith.extui %11 : vector<16x64xi1> to vector<16x64xi32>
    %13 = arith.sitofp %12 : vector<16x64xi32> to vector<16x64xf32>
    %14 = arith.addf %8, %13 : vector<16x64xf32>
    %15 = vector.extract_strided_slice %2 {offsets = [0, 1], sizes = [16, 1], strides = [1, 1]} : vector<16x8xi32> to vector<16x1xi32>
    %16 = vector.broadcast %15 : vector<16x1xi32> to vector<16x64xi32>
    %17 = arith.cmpi eq, %16, %7 : vector<16x64xi32>
    %18 = arith.extui %17 : vector<16x64xi1> to vector<16x64xi32>
    %19 = arith.sitofp %18 : vector<16x64xi32> to vector<16x64xf32>
    %20 = arith.addf %14, %19 : vector<16x64xf32>
    %21 = vector.extract_strided_slice %2 {offsets = [0, 2], sizes = [16, 1], strides = [1, 1]} : vector<16x8xi32> to vector<16x1xi32>
    %22 = vector.broadcast %21 : vector<16x1xi32> to vector<16x64xi32>
    %23 = arith.cmpi eq, %22, %7 : vector<16x64xi32>
    %24 = arith.extui %23 : vector<16x64xi1> to vector<16x64xi32>
    %25 = arith.sitofp %24 : vector<16x64xi32> to vector<16x64xf32>
    %26 = arith.addf %20, %25 : vector<16x64xf32>
    %27 = vector.extract_strided_slice %2 {offsets = [0, 3], sizes = [16, 1], strides = [1, 1]} : vector<16x8xi32> to vector<16x1xi32>
    %28 = vector.broadcast %27 : vector<16x1xi32> to vector<16x64xi32>
    %29 = arith.cmpi eq, %28, %7 : vector<16x64xi32>
    %30 = arith.extui %29 : vector<16x64xi1> to vector<16x64xi32>
    %31 = arith.sitofp %30 : vector<16x64xi32> to vector<16x64xf32>
    %32 = arith.addf %26, %31 : vector<16x64xf32>
    %33 = vector.extract_strided_slice %2 {offsets = [0, 4], sizes = [16, 1], strides = [1, 1]} : vector<16x8xi32> to vector<16x1xi32>
    %34 = vector.broadcast %33 : vector<16x1xi32> to vector<16x64xi32>
    %35 = arith.cmpi eq, %34, %7 : vector<16x64xi32>
    %36 = arith.extui %35 : vector<16x64xi1> to vector<16x64xi32>
    %37 = arith.sitofp %36 : vector<16x64xi32> to vector<16x64xf32>
    %38 = arith.addf %32, %37 : vector<16x64xf32>
    %39 = vector.extract_strided_slice %2 {offsets = [0, 5], sizes = [16, 1], strides = [1, 1]} : vector<16x8xi32> to vector<16x1xi32>
    %40 = vector.broadcast %39 : vector<16x1xi32> to vector<16x64xi32>
    %41 = arith.cmpi eq, %40, %7 : vector<16x64xi32>
    %42 = arith.extui %41 : vector<16x64xi1> to vector<16x64xi32>
    %43 = arith.sitofp %42 : vector<16x64xi32> to vector<16x64xf32>
    %44 = arith.addf %38, %43 : vector<16x64xf32>
    %45 = vector.extract_strided_slice %2 {offsets = [0, 6], sizes = [16, 1], strides = [1, 1]} : vector<16x8xi32> to vector<16x1xi32>
    %46 = vector.broadcast %45 : vector<16x1xi32> to vector<16x64xi32>
    %47 = arith.cmpi eq, %46, %7 : vector<16x64xi32>
    %48 = arith.extui %47 : vector<16x64xi1> to vector<16x64xi32>
    %49 = arith.sitofp %48 : vector<16x64xi32> to vector<16x64xf32>
    %50 = arith.addf %44, %49 : vector<16x64xf32>
    %51 = vector.extract_strided_slice %2 {offsets = [0, 7], sizes = [16, 1], strides = [1, 1]} : vector<16x8xi32> to vector<16x1xi32>
    %52 = vector.broadcast %51 : vector<16x1xi32> to vector<16x64xi32>
    %53 = arith.cmpi eq, %52, %7 : vector<16x64xi32>
    %54 = arith.extui %53 : vector<16x64xi1> to vector<16x64xi32>
    %55 = arith.sitofp %54 : vector<16x64xi32> to vector<16x64xf32>
    %56 = arith.addf %50, %55 : vector<16x64xf32>
    %c0_3 = arith.constant 0 : index
    %c0_4 = arith.constant 0 : index
    %57 = vector.load %arg2[%c0_3, %c0_4] : memref<64x128xf32, #tpu.memory_space<vmem>>, vector<64x128xf32>
    %cst_5 = arith.constant dense<0.000000e+00> : vector<16x128xf32>
    %58 = tpu.matmul %56, %57, %cst_5 {dimension_numbers = #tpu.dot_dimension_numbers<[1], [0], [0], [1], [0, 0, 1, 1], [], []>} : vector<16x64xf32>, vector<64x128xf32>, vector<16x128xf32> -> vector<16x128xf32>
    %59 = arith.addf %4, %58 : vector<16x128xf32>
    %cst_6 = arith.constant 0.000000e+00 : f32
    %60 = vector.broadcast %cst_6 : f32 to vector<16x128xf32>
    %61 = tpu.iota {dimensions = array<i32: 1>} : vector<16x48xi32>
    %c0_i32_7 = arith.constant 0 : i32
    %62 = vector.broadcast %c0_i32_7 : i32 to vector<16x48xi32>
    %63 = arith.addi %61, %62 : vector<16x48xi32>
    %cst_8 = arith.constant 0.000000e+00 : f32
    %64 = vector.broadcast %cst_8 : f32 to vector<16x48xf32>
    %65 = vector.extract_strided_slice %3 {offsets = [0, 0], sizes = [16, 1], strides = [1, 1]} : vector<16x6xi32> to vector<16x1xi32>
    %66 = vector.broadcast %65 : vector<16x1xi32> to vector<16x48xi32>
    %67 = arith.cmpi eq, %66, %63 : vector<16x48xi32>
    %68 = arith.extui %67 : vector<16x48xi1> to vector<16x48xi32>
    %69 = arith.sitofp %68 : vector<16x48xi32> to vector<16x48xf32>
    %70 = arith.addf %64, %69 : vector<16x48xf32>
    %71 = vector.extract_strided_slice %3 {offsets = [0, 1], sizes = [16, 1], strides = [1, 1]} : vector<16x6xi32> to vector<16x1xi32>
    %72 = vector.broadcast %71 : vector<16x1xi32> to vector<16x48xi32>
    %73 = arith.cmpi eq, %72, %63 : vector<16x48xi32>
    %74 = arith.extui %73 : vector<16x48xi1> to vector<16x48xi32>
    %75 = arith.sitofp %74 : vector<16x48xi32> to vector<16x48xf32>
    %76 = arith.addf %70, %75 : vector<16x48xf32>
    %77 = vector.extract_strided_slice %3 {offsets = [0, 2], sizes = [16, 1], strides = [1, 1]} : vector<16x6xi32> to vector<16x1xi32>
    %78 = vector.broadcast %77 : vector<16x1xi32> to vector<16x48xi32>
    %79 = arith.cmpi eq, %78, %63 : vector<16x48xi32>
    %80 = arith.extui %79 : vector<16x48xi1> to vector<16x48xi32>
    %81 = arith.sitofp %80 : vector<16x48xi32> to vector<16x48xf32>
    %82 = arith.addf %76, %81 : vector<16x48xf32>
    %83 = vector.extract_strided_slice %3 {offsets = [0, 3], sizes = [16, 1], strides = [1, 1]} : vector<16x6xi32> to vector<16x1xi32>
    %84 = vector.broadcast %83 : vector<16x1xi32> to vector<16x48xi32>
    %85 = arith.cmpi eq, %84, %63 : vector<16x48xi32>
    %86 = arith.extui %85 : vector<16x48xi1> to vector<16x48xi32>
    %87 = arith.sitofp %86 : vector<16x48xi32> to vector<16x48xf32>
    %88 = arith.addf %82, %87 : vector<16x48xf32>
    %89 = vector.extract_strided_slice %3 {offsets = [0, 4], sizes = [16, 1], strides = [1, 1]} : vector<16x6xi32> to vector<16x1xi32>
    %90 = vector.broadcast %89 : vector<16x1xi32> to vector<16x48xi32>
    %91 = arith.cmpi eq, %90, %63 : vector<16x48xi32>
    %92 = arith.extui %91 : vector<16x48xi1> to vector<16x48xi32>
    %93 = arith.sitofp %92 : vector<16x48xi32> to vector<16x48xf32>
    %94 = arith.addf %88, %93 : vector<16x48xf32>
    %95 = vector.extract_strided_slice %3 {offsets = [0, 5], sizes = [16, 1], strides = [1, 1]} : vector<16x6xi32> to vector<16x1xi32>
    %96 = vector.broadcast %95 : vector<16x1xi32> to vector<16x48xi32>
    %97 = arith.cmpi eq, %96, %63 : vector<16x48xi32>
    %98 = arith.extui %97 : vector<16x48xi1> to vector<16x48xi32>
    %99 = arith.sitofp %98 : vector<16x48xi32> to vector<16x48xf32>
    %100 = arith.addf %94, %99 : vector<16x48xf32>
    %c0_9 = arith.constant 0 : index
    %c0_10 = arith.constant 0 : index
    %101 = vector.load %arg3[%c0_9, %c0_10] : memref<48x128xf32, #tpu.memory_space<vmem>>, vector<48x128xf32>
    %cst_11 = arith.constant dense<0.000000e+00> : vector<16x128xf32>
    %102 = tpu.matmul %100, %101, %cst_11 {dimension_numbers = #tpu.dot_dimension_numbers<[1], [0], [0], [1], [0, 0, 1, 1], [], []>} : vector<16x48xf32>, vector<48x128xf32>, vector<16x128xf32> -> vector<16x128xf32>
    %103 = arith.addf %60, %102 : vector<16x128xf32>
    %104 = tpu.concatenate %59, %103 in 1 : vector<16x128xf32>, vector<16x128xf32> -> vector<16x256xf32>
    %c0_12 = arith.constant 0 : index
    %c0_13 = arith.constant 0 : index
    %105 = vector.load %arg4[%c0_12, %c0_13] : memref<256x128xf32, #tpu.memory_space<vmem>>, vector<256x128xf32>
    %cst_14 = arith.constant dense<0.000000e+00> : vector<16x128xf32>
    %106 = tpu.matmul %104, %105, %cst_14 {dimension_numbers = #tpu.dot_dimension_numbers<[1], [0], [0], [1], [0, 0, 1, 1], [], []>} : vector<16x256xf32>, vector<256x128xf32>, vector<16x128xf32> -> vector<16x128xf32>
    %c0_15 = arith.constant 0 : index
    %c0_16 = arith.constant 0 : index
    %107 = vector.load %arg5[%c0_15, %c0_16] : memref<1x128xf32, #tpu.memory_space<vmem>>, vector<1x128xf32>
    %108 = vector.broadcast %107 : vector<1x128xf32> to vector<16x128xf32>
    %109 = arith.addf %106, %108 : vector<16x128xf32>
    %110 = vector.extract_strided_slice %109 {offsets = [0, 0], sizes = [8, 128], strides = [1, 1]} : vector<16x128xf32> to vector<8x128xf32>
    %111 = vector.extract_strided_slice %109 {offsets = [8, 0], sizes = [8, 128], strides = [1, 1]} : vector<16x128xf32> to vector<8x128xf32>
    %112 = tpu.concatenate %110, %111 in 1 : vector<8x128xf32>, vector<8x128xf32> -> vector<8x256xf32>
    %c0_17 = arith.constant 0 : index
    %c0_18 = arith.constant 0 : index
    %113 = vector.load %arg6[%c0_17, %c0_18] : memref<256x256xf32, #tpu.memory_space<vmem>>, vector<256x256xf32>
    %cst_19 = arith.constant dense<0.000000e+00> : vector<8x256xf32>
    %114 = tpu.matmul %112, %113, %cst_19 {dimension_numbers = #tpu.dot_dimension_numbers<[1], [0], [0], [1], [0, 0, 1, 1], [], []>} : vector<8x256xf32>, vector<256x256xf32>, vector<8x256xf32> -> vector<8x256xf32>
    %c0_20 = arith.constant 0 : index
    %c0_21 = arith.constant 0 : index
    %115 = vector.load %arg7[%c0_20, %c0_21] : memref<1x256xf32, #tpu.memory_space<vmem>>, vector<1x256xf32>
    %116 = vector.broadcast %115 : vector<1x256xf32> to vector<8x256xf32>
    %117 = arith.addf %114, %116 : vector<8x256xf32>
    %cst_22 = arith.constant 0.000000e+00 : f32
    %118 = vector.broadcast %cst_22 : f32 to vector<8x256xf32>
    %119 = arith.maximumf %117, %118 : vector<8x256xf32>
    %c0_23 = arith.constant 0 : index
    %c0_24 = arith.constant 0 : index
    %120 = vector.load %arg8[%c0_23, %c0_24] : memref<256x128xf32, #tpu.memory_space<vmem>>, vector<256x128xf32>
    %cst_25 = arith.constant dense<0.000000e+00> : vector<8x128xf32>
    %121 = tpu.matmul %119, %120, %cst_25 {dimension_numbers = #tpu.dot_dimension_numbers<[1], [0], [0], [1], [0, 0, 1, 1], [], []>} : vector<8x256xf32>, vector<256x128xf32>, vector<8x128xf32> -> vector<8x128xf32>
    %c0_26 = arith.constant 0 : index
    %c0_27 = arith.constant 0 : index
    %122 = vector.load %arg9[%c0_26, %c0_27] : memref<1x128xf32, #tpu.memory_space<vmem>>, vector<1x128xf32>
    %123 = vector.broadcast %122 : vector<1x128xf32> to vector<8x128xf32>
    %124 = arith.addf %121, %123 : vector<8x128xf32>
    %125 = arith.negf %124 : vector<8x128xf32>
    %126 = math.exp %125 : vector<8x128xf32>
    %cst_28 = arith.constant 1.000000e+00 : f32
    %127 = vector.broadcast %cst_28 : f32 to vector<8x128xf32>
    %128 = arith.addf %127, %126 : vector<8x128xf32>
    %129 = arith.divf %127, %128 : vector<8x128xf32>
    %c0_29 = arith.constant 0 : index
    %c0_30 = arith.constant 0 : index
    %130 = vector.load %arg10[%c0_29, %c0_30] : memref<8x128xf32, #tpu.memory_space<vmem>>, vector<8x128xf32>
    tpu.vector_store %arg10[%c0_29, %c0_30], %129 {strides = array<i32>} : memref<8x128xf32, #tpu.memory_space<vmem>>, vector<8x128xf32>,
    return
  }
  func.func @transform_0(%arg0: i32) -> (i32, i32, i32) {
    %c0_i32 = arith.constant 0 : i32
    %c0_i32_0 = arith.constant 0 : i32
    %c0_i32_1 = arith.constant 0 : i32
    return %c0_i32, %arg0, %c0_i32_0 : i32, i32, i32
  }
  func.func @transform_1(%arg0: i32) -> (i32, i32) {
    %c0_i32 = arith.constant 0 : i32
    %c0_i32_0 = arith.constant 0 : i32
    %c0_i32_1 = arith.constant 0 : i32
    return %c0_i32, %c0_i32_0 : i32, i32
  }
  func.func @transform_2(%arg0: i32) -> (i32, i32) {
    %c0_i32 = arith.constant 0 : i32
    %c0_i32_0 = arith.constant 0 : i32
    %c0_i32_1 = arith.constant 0 : i32
    return %c0_i32, %c0_i32_0 : i32, i32
  }
  func.func @transform_3(%arg0: i32) -> (i32, i32) {
    %c0_i32 = arith.constant 0 : i32
    %c0_i32_0 = arith.constant 0 : i32
    %c0_i32_1 = arith.constant 0 : i32
    return %c0_i32, %c0_i32_0 : i32, i32
  }
  func.func @transform_4(%arg0: i32) -> (i32, i32) {
    %c0_i32 = arith.constant 0 : i32
    %c0_i32_0 = arith.constant 0 : i32
    %c0_i32_1 = arith.constant 0 : i32
    return %c0_i32, %c0_i32_0 : i32, i32
  }
  func.func @transform_5(%arg0: i32) -> (i32, i32) {
    %c0_i32 = arith.constant 0 : i32
    %c0_i32_0 = arith.constant 0 : i32
    %c0_i32_1 = arith.constant 0 : i32
    return %c0_i32, %c0_i32_0 : i32, i32
  }
  func.func @transform_6(%arg0: i32) -> (i32, i32) {
    %c0_i32 = arith.constant 0 : i32
    %c0_i32_0 = arith.constant 0 : i32
    %c0_i32_1 = arith.constant 0 : i32
    return %c0_i32, %c0_i32_0 : i32, i32
  }
  func.func @transform_7(%arg0: i32) -> (i32, i32) {
    %c0_i32 = arith.constant 0 : i32
    %c0_i32_0 = arith.constant 0 : i32
    %c0_i32_1 = arith.constant 0 : i32
    return %c0_i32, %c0_i32_0 : i32, i32
  }
  func.func @transform_8(%arg0: i32) -> (i32, i32) {
    %c0_i32 = arith.constant 0 : i32
    %c0_i32_0 = arith.constant 0 : i32
    %c0_i32_1 = arith.constant 0 : i32
    return %c0_i32, %c0_i32_0 : i32, i32
  }
  func.func @transform_9(%arg0: i32) -> (i32, i32) {
    %c0_i32 = arith.constant 0 : i32
    %c0_i32_0 = arith.constant 0 : i32
    return %arg0, %c0_i32 : i32, i32
  }
}

</mosaic_0001>

<bundles_post_ra>
// kernel: tpu_custom_call.1
= control target key start
LH: loop header
LB: loop body
LE: loop exit
PB: predicated region body
PF: predicated region fallthrough
CT: control target
= control target key end

     0   :  { %14 = vsyncpa [#allocation3], 0  ;;  %s1502_s0 = inlined_call_operand.hbm [shape: s32[2,8,14], index: 0, kind: input, shape index: {}]   ;;  %s1503_s1 = inlined_call_operand.hbm [shape: f32[64,128], index: 1, kind: input, shape index: {}]   ;;  %s1504_s2 = inlined_call_operand.hbm [shape: f32[48,128], index: 2, kind: input, shape index: {}]   ;;  %s1505_s3 = inlined_call_operand.hbm [shape: f32[256,128], index: 3, kind: input, shape index: {}]   ;;  %s1506_s4 = inlined_call_operand.vmem [shape: f32[1,128], index: 4, kind: input, shape index: {}]   ;;  %s1507_s5 = inlined_call_operand.hbm [shape: f32[256,256], index: 5, kind: input, shape index: {}]   ;;  %s1508_s6 = inlined_call_operand.vmem [shape: f32[1,256], index: 6, kind: input, shape index: {}]   ;;  %s1509_s7 = inlined_call_operand.hbm [shape: f32[256,128], index: 7, kind: input, shape index: {}]   ;;  %s1510_s8 = inlined_call_operand.vmem [shape: f32[1,128], index: 8, kind: input, shape index: {}]   ;;  %s1511_s9 = inlined_call_operand.hbm [shape: f32[8,128], index: 9, kind: output, shape index: {}]  }
   0x1   :  { %15 = vsyncpa [#allocation6], 0 }
   0x2   :  { %16 = vsyncpa [#allocation9], 0 }
   0x3   :  { %17 = vsyncpa [#allocation12], 0 }
   0x4   :  { %18 = vsyncpa [#allocation4], 0  ;;  %s1255_s30 = smov [#allocation5]   ;;  %s1256_s11 = smov [#allocation8]  }
   0x5   :  { %s36_s10 = sshll.u32 %s1255_s30, 4  ;;  %s60_s12 = sshll.u32 %s1256_s11, 4  ;;  %s37_s10 = int_to_ptr.vmem [resolvable:$true] %s36_s10  ;;  %s61_s12 = int_to_ptr.vmem [resolvable:$true] %s60_s12 }
   0x6   :  { %s1113_s13 = scalar_lea.vmem %s37_s10, 1024  ;;  %p1118_p1 = scmp.lt.s32.totalorder %s37_s10, %s37_s10 }
   0x7   :  { %p1114_p0 = scmp.ne.s32.totalorder %s37_s10, %s1113_s13  ;;  %p1119_p2 = scmp.lt.s32.totalorder %s1113_s13, %s1113_s13 }
   0x9   :  { %p1120_p3 = por %p1119_p2, %p1118_p1 }
   0xb   :  { %p1121_p4 = pnand %p1120_p3, %p1114_p0 }
   0xd   :  { %1124 = shalt.err (!%p1121_p4)
}
   0xe   :  { %s1257_s14 = smov 128   ;;  %s1258_s15 = smov 8  }
   0xf   :  { %42 = dma.hbm_to_vmem [thread:$0]  %s1503_s1, 1024, %s37_s10, [#allocation6], %s1257_s14, %s1257_s14, %s1258_s15  }
  0x10   :  { %s1133_s18 = scalar_lea.vmem %s61_s12, 4096  ;;  %p1138_p6 = scmp.lt.s32.totalorder %s61_s12, %s61_s12 }
  0x11   :  { %p1134_p5 = scmp.ne.s32.totalorder %s61_s12, %s1133_s18  ;;  %p1139_p7 = scmp.lt.s32.totalorder %s1133_s18, %s1133_s18 }
  0x13   :  { %p1140_p8 = por %p1139_p7, %p1138_p6 }
  0x15   :  { %p1141_p9 = pnand %p1140_p8, %p1134_p5 }
  0x17   :  { %1144 = shalt.err (!%p1141_p9)
}
  0x18   :  { %66 = dma.hbm_to_vmem [thread:$0]  %s1505_s3, 4096, %s61_s12, [#allocation9], %s1257_s14, %s1257_s14, %s1258_s15  }
  0x19   :  { %s1259_s21 = smov [#allocation2]   ;;  %s1260_s23 = smov [#allocation7]  }
  0x1a   :  { %s24_s22 = sshll.u32 %s1259_s21, 4  ;;  %s48_s24 = sshll.u32 %s1260_s23, 4  ;;  %s25_s22 = int_to_ptr.vmem [resolvable:$true] %s24_s22  ;;  %s49_s24 = int_to_ptr.vmem [resolvable:$true] %s48_s24 }
  0x1b   :  { %s1153_s1 = scalar_lea.vmem %s25_s22, 256  ;;  %p1158_p11 = scmp.lt.s32.totalorder %s25_s22, %s25_s22 }
  0x1c   :  { %p1154_p10 = scmp.ne.s32.totalorder %s25_s22, %s1153_s1  ;;  %p1159_p12 = scmp.lt.s32.totalorder %s1153_s1, %s1153_s1 }
  0x1e   :  { %p1160_p13 = por %p1159_p12, %p1158_p11 }
  0x20   :  { %p1161_p0 = pnand %p1160_p13, %p1154_p10 }
  0x22   :  { %1164 = shalt.err (!%p1161_p0)
}
  0x23   :  { %30 = dma.hbm_to_vmem [thread:$0]  %s1502_s0, 256, %s25_s22, [#allocation3], %s1257_s14, %s1257_s14, %s1258_s15  }
  0x24   :  { %s1173_s3 = scalar_lea.vmem %s49_s24, 768  ;;  %p1178_p2 = scmp.lt.s32.totalorder %s49_s24, %s49_s24 }
  0x25   :  { %p1174_p1 = scmp.ne.s32.totalorder %s49_s24, %s1173_s3  ;;  %p1179_p3 = scmp.lt.s32.totalorder %s1173_s3, %s1173_s3 }
  0x27   :  { %p1180_p4 = por %p1179_p3, %p1178_p2 }
  0x29   :  { %p1181_p5 = pnand %p1180_p4, %p1174_p1 }
  0x2b   :  { %1184 = shalt.err (!%p1181_p5)
}
  0x2c   :  { %54 = dma.hbm_to_vmem [thread:$0]  %s1504_s2, 768, %s49_s24, [#allocation6], %s1257_s14, %s1257_s14, %s1258_s15  }
  0x2d   :  { %s1261_s29 = smov [#allocation10]  }
  0x2e   :  { %s74_s30 = sshll.u32 %s1261_s29, 4  ;;  %s75_s30 = int_to_ptr.vmem [resolvable:$true] %s74_s30 }
  0x2f   :  { %s1193_s10 = scalar_lea.vmem %s75_s30, 8192  ;;  %p1198_p7 = scmp.lt.s32.totalorder %s75_s30, %s75_s30 }
  0x30   :  { %p1194_p6 = scmp.ne.s32.totalorder %s75_s30, %s1193_s10  ;;  %p1199_p8 = scmp.lt.s32.totalorder %s1193_s10, %s1193_s10 }
  0x32   :  { %p1200_p9 = por %p1199_p8, %p1198_p7 }
  0x34   :  { %p1201_p10 = pnand %p1200_p9, %p1194_p6 }
  0x36   :  { %1204 = shalt.err (!%p1201_p10)
}
  0x37   :  { %s1262_s0 = smov 256   ;;  %s1263_s11 = smov 16  }
  0x38   :  { %80 = dma.hbm_to_vmem [thread:$0]  %s1507_s5, 8192, %s75_s30, [#allocation9], %s1262_s0, %s1262_s0, %s1263_s11  }
  0x39   :  { %s1264_s16 = smov [#allocation11]  }
  0x3a   :  { %s88_s17 = sshll.u32 %s1264_s16, 4  ;;  %s89_s17 = int_to_ptr.vmem [resolvable:$true] %s88_s17 }
  0x3b   :  { %s1213_s2 = scalar_lea.vmem %s89_s17, 4096  ;;  %p1218_p12 = scmp.lt.s32.totalorder %s89_s17, %s89_s17 }
  0x3c   :  { %p1214_p11 = scmp.ne.s32.totalorder %s89_s17, %s1213_s2  ;;  %p1219_p13 = scmp.lt.s32.totalorder %s1213_s2, %s1213_s2 }
  0x3e   :  { %p1220_p0 = por %p1219_p13, %p1218_p12 }
  0x40   :  { %p1221_p1 = pnand %p1220_p0, %p1214_p11 }
  0x42   :  { %1224 = shalt.err (!%p1221_p1)
}
  0x43   :  { %94 = dma.hbm_to_vmem [thread:$0]  %s1509_s7, 4096, %s89_s17, [#allocation12], %s1257_s14, %s1257_s14, %s1258_s15  }
  0x44   :  { %1245 = dma.done.wait [#allocation3], 256  }
  0x45   :  { %1246 = vsyncadd [#allocation3], 4294967040 }
  0x46   :  { %1247 = dma.done.wait [#allocation6], 1792  }
  0x47   :  { %1248 = vsyncadd [#allocation6], 4294965504 }
  0x48   :  { %1249 = dma.done.wait [#allocation9], 12288  }
  0x49   :  { %1250 = vsyncadd [#allocation9], 4294955008 }
  0x4a   :  { %1251 = dma.done.wait [#allocation12], 4096  }
  0x4b   :  { %1252 = vsyncadd [#allocation12], 4294963200  ;;  %v1265_v0 = vmov 0   ;;  %v1364_v1 = vld [vmem:[#allocation2 + $0x8] sm:$0xff]  ;;  %v1366_v2 = vld [vmem:[#allocation2] sm:$0xff]  ;;  %v1266_v3 = vmov 1   ;;  %v117_v45 = vlaneseq }
  0x4c   :  { %1078 = vset.pattern.permute.xlu1 %v1265_v0  ;;  %1076 = vset.pattern.permute.xlu0 %v1265_v0  ;;  %v1267_v4 = vmov 2   ;;  %v1268_v5 = vmov 8   ;;  %v1269_v6 = vmov 3   ;;  %v1270_v7 = vmov 9   ;;  %v410_v16 = vld [vmem:[#allocation7 + $0x28] sm:$0xff]  ;;  %v238_v17 = vld [vmem:[#allocation5 + $0x38] sm:$0xff] }
  0x4d   :  { %123 = vperm.xlu1 %1078, %v1364_v1   ;;  %120 = vperm.xlu0 %1076, %v1366_v2   ;;  %v1271_v8 = vmov 4   ;;  %v1272_v9 = vmov 11   ;;  %v1273_v10 = vmov 5   ;;  %v1274_v11 = vmov 10   ;;  %v409_v18 = vld [vmem:[#allocation7 + $0x20] sm:$0xff]  ;;  %v237_v19 = vld [vmem:[#allocation5 + $0x30] sm:$0xff] }
  0x4e   :  { %v1275_v12 = vmov 12   ;;  %v1276_v13 = vmov 7   ;;  %v1277_v14 = vmov 13   ;;  %v1278_v15 = vmov 6   ;;  %1035 = vmatprep.subr.mxu1 %v410_v16  ;;  %1016 = vmatprep.subr.mxu0 %v238_v17  ;;  %v408_v20 = vld [vmem:[#allocation7 + $0x18] sm:$0xff]  ;;  %v236_v21 = vld [vmem:[#allocation5 + $0x28] sm:$0xff] }
  0x4f   :  { %1036 = vmatpush3.msra.mxu1 %v410_v16  ;;  %1017 = vmatpush3.msra.mxu0 %v238_v17  ;;  %v407_v22 = vld [vmem:[#allocation7 + $0x10] sm:$0xff]  ;;  %v235_v23 = vld [vmem:[#allocation5 + $0x20] sm:$0xff]  ;;  %v406_v24 = vld [vmem:[#allocation7 + $0x8] sm:$0xff]  ;;  %v1407_v48 = vand.u32 127, %v117_v45  ;;  %v1279_v51 = vmov 0.0   ;;  %vm239_vm10 = vcmask 523264  }
  0x50   :  { %1037 = vmatprep.subr.mxu1 %v409_v18  ;;  %1018 = vmatprep.subr.mxu0 %v237_v19  ;;  %v234_v25 = vld [vmem:[#allocation5 + $0x18] sm:$0xff]  ;;  %v405_v26 = vld [vmem:[#allocation7] sm:$0xff]  ;;  %v233_v27 = vld [vmem:[#allocation5 + $0x10] sm:$0xff] }
  0x51   :  { %1079 = vset.pattern.permute.xlu1 %v1266_v3  ;;  %1077 = vset.pattern.permute.xlu0 %v1266_v3  ;;  %v232_v28 = vld [vmem:[#allocation5 + $0x8] sm:$0xff]  ;;  %v231_v29 = vld [vmem:[#allocation5] sm:$0xff] }
  0x52   :  { %137 = vperm.xlu1 %1079, %v1364_v1   ;;  %134 = vperm.xlu0 %1077, %v1366_v2   ;;  %v524_v30 = vld [vmem:[#allocation8 + $0xf8] sm:$0xff] }
  0x53   :  { %1038 = vmatpush3.msra.mxu1 %v409_v18  ;;  %1019 = vmatpush3.msra.mxu0 %v237_v19 }
  0x54   :  { %1039 = vmatprep.subr.mxu1 %v408_v20  ;;  %1020 = vmatprep.subr.mxu0 %v236_v21 }
  0x55   :  { %1040 = vmatpush3.msra.mxu1 %v408_v20  ;;  %1021 = vmatpush3.msra.mxu0 %v236_v21 }
  0x56   :  { %1080 = vset.pattern.permute.xlu1 %v1267_v4  ;;  %1081 = vset.pattern.permute.xlu0 %v1267_v4 }
  0x57   :  { %148 = vperm.xlu1 %1080, %v1366_v2   ;;  %151 = vperm.xlu0 %1081, %v1364_v1  }
  0x58   :  { %1041 = vmatprep.subr.mxu1 %v407_v22  ;;  %1022 = vmatprep.subr.mxu0 %v235_v23 }
  0x59   :  { %1042 = vmatpush3.msra.mxu1 %v407_v22  ;;  %1023 = vmatpush3.msra.mxu0 %v235_v23 }
  0x5a   :  { %1043 = vmatprep.subr.mxu1 %v406_v24  ;;  %1024 = vmatprep.subr.mxu0 %v234_v25 }
  0x5b   :  { %1082 = vset.pattern.permute.xlu1 %v1268_v5  ;;  %1084 = vset.pattern.permute.xlu0 %v1269_v6 }
  0x5c   :  { %322 = vperm.xlu1 %1082, %v1366_v2   ;;  %162 = vperm.xlu0 %1084, %v1366_v2  }
  0x5d   :  { %1044 = vmatpush3.msra.mxu1 %v406_v24  ;;  %1025 = vmatpush3.msra.mxu0 %v234_v25 }
  0x5e   :  { %1045 = vmatprep.subr.mxu1 %v405_v26  ;;  %1026 = vmatprep.subr.mxu0 %v233_v27 }
  0x5f   :  { %1046 = vmatpush3.msra.mxu1 %v405_v26  ;;  %1027 = vmatpush3.msra.mxu0 %v233_v27 }
  0x60   :  { %1083 = vset.pattern.permute.xlu1 %v1270_v7  ;;  %165 = vperm.xlu0 %1084, %v1364_v1  }
  0x61   :  { %336 = vperm.xlu1 %1083, %v1366_v2   ;;  %1028 = vmatprep.subr.mxu0 %v232_v28 }
  0x62   :  { %1029 = vmatpush3.msra.mxu0 %v232_v28  ;;  %943 = vmatprep.subr.mxu1 %v524_v30 }
  0x63   :  { %1030 = vmatprep.subr.mxu0 %v231_v29 }
  0x64   :  { %1088 = vset.pattern.permute.xlu0 %v1271_v8  ;;  %1031 = vmatpush3.msra.mxu0 %v231_v29 }
  0x65   :  { %1085 = vset.pattern.permute.xlu1 %v1268_v5  ;;  %176 = vperm.xlu0 %1088, %v1366_v2  }
  0x66   :  { %325 = vperm.xlu1 %1085, %v1364_v1  }
  0x69   :  { %1090 = vset.pattern.permute.xlu0 %v1272_v9 }
  0x6a   :  { %1086 = vset.pattern.permute.xlu1 %v1270_v7  ;;  %364 = vperm.xlu0 %1090, %v1366_v2  }
  0x6b   :  { %339 = vperm.xlu1 %1086, %v1364_v1  }
  0x6e   :  { %1093 = vset.pattern.permute.xlu0 %v1273_v10 }
  0x6f   :  { %1087 = vset.pattern.permute.xlu1 %v1274_v11  ;;  %193 = vperm.xlu0 %1093, %v1364_v1  }
  0x70   :  { %350 = vperm.xlu1 %1087, %v1366_v2  }
  0x73   :  { %1096 = vset.pattern.permute.xlu0 %v1275_v12 }
  0x74   :  { %353 = vperm.xlu1 %1087, %v1364_v1   ;;  %381 = vperm.xlu0 %1096, %v1364_v1  }
  0x78   :  { %1089 = vset.pattern.permute.xlu1 %v1271_v8  ;;  %1098 = vset.pattern.permute.xlu0 %v1276_v13 }
  0x79   :  { %179 = vperm.xlu1 %1089, %v1364_v1   ;;  %218 = vperm.xlu0 %1098, %v1366_v2  }
  0x7d   :  { %1091 = vset.pattern.permute.xlu1 %v1273_v10  ;;  %1100 = vset.pattern.permute.xlu0 %v1277_v14 }
  0x7e   :  { %190 = vperm.xlu1 %1091, %v1366_v2  }
  0x82   :  { %1092 = vset.pattern.permute.xlu1 %v1272_v9 }
  0x83   :  { %367 = vperm.xlu1 %1092, %v1364_v1  }
  0x87   :  { %1094 = vset.pattern.permute.xlu1 %v1275_v12 }
  0x88   :  { %378 = vperm.xlu1 %1094, %v1366_v2  }
  0x8c   :  { %1095 = vset.pattern.permute.xlu1 %v1278_v15 }
  0x8d   :  { %204 = vperm.xlu1 %1095, %v1366_v2  }
  0x91   :  { %207 = vperm.xlu1 %1095, %v1364_v1  }
  0x95   :  { %1097 = vset.pattern.permute.xlu1 %v1277_v14 }
  0x96   :  { %392 = vperm.xlu1 %1097, %v1366_v2  }
  0x9a   :  { %395 = vperm.xlu1 %1097, %v1364_v1  }
  0x9e   :  { %1099 = vset.pattern.permute.xlu1 %v1276_v13 }
  0x9f   :  { %221 = vperm.xlu1 %1099, %v1364_v1  }
  0xc8   :  { %v1396_v31 = vpop.permute.xlu1 %123  ;;  %v121_v34 = vpop.permute.xlu0 %120 }
  0xc9   :  { %vm125_vm0 = vcmp.eq.s32.totalorder %v121_v34, %v1407_v48  ;;  %vm126_vm11 = vcmp.eq.s32.totalorder %v1396_v31, %v1407_v48 }
  0xca   :  { %v890_v52 = vsel %vm125_vm0, 1.0, %v1279_v51  ;;  %v891_v20 = vsel %vm126_vm11, 1.0, %v1279_v51 }
  0xcd   :  { %v138_v32 = vpop.permute.xlu1 %137  ;;  %v135_v36 = vpop.permute.xlu0 %134 }
  0xce   :  { %vm139_vm1 = vcmp.eq.s32.totalorder %v135_v36, %v1407_v48  ;;  %vm140_vm12 = vcmp.eq.s32.totalorder %v138_v32, %v1407_v48 }
  0xcf   :  { %v892_v53 = vsel %vm139_vm1, 1.0, %v1279_v51  ;;  %v893_v11 = vsel %vm140_vm12, 1.0, %v1279_v51 }
  0xd0   :  { %v145_v56 = vadd.f32 %v892_v53, %v890_v52  ;;  %v146_v23 = vadd.f32 %v893_v11, %v891_v20  ;;  %v507_v52 = vld [vmem:[#allocation8 + $0x70] sm:$0xff]  ;;  %v496_v11 = vld [vmem:[#allocation8 + $0x18] sm:$0xff]  ;;  %v636_v20 = vld [vmem:[#allocation10 + $0xe8] sm:$0xff] }
  0xd2   :  { %v149_v33 = vpop.permute.xlu1 %148  ;;  %v1400_v39 = vpop.permute.xlu0 %151 }
  0xd3   :  { %vm153_vm2 = vcmp.eq.s32.totalorder %v149_v33, %v1407_v48 }
  0xd4   :  { %v894_v57 = vsel %vm153_vm2, 1.0, %v1279_v51  ;;  %vm154_vm2 = vcmp.eq.s32.totalorder %v1400_v39, %v1407_v48 }
  0xd5   :  { %v159_v60 = vadd.f32 %v894_v57, %v145_v56  ;;  %v895_v21 = vsel %vm154_vm2, 1.0, %v1279_v51  ;;  %v506_v56 = vld [vmem:[#allocation8 + $0x68] sm:$0xff] }
  0xd6   :  { %v160_v29 = vadd.f32 %v895_v21, %v146_v23  ;;  %v635_v21 = vld [vmem:[#allocation10 + $0xe0] sm:$0xff]  ;;  %v633_v23 = vld [vmem:[#allocation10 + $0xd0] sm:$0xff] }
  0xd7   :  { %v323_v35 = vpop.permute.xlu1 %322  ;;  %v163_v41 = vpop.permute.xlu0 %162 }
  0xd8   :  { %vm167_vm3 = vcmp.eq.s32.totalorder %v163_v41, %v1407_v48  ;;  %vm327_vm7 = vcmp.eq.s32.totalorder %v323_v35, %v1407_v48 }
  0xd9   :  { %v896_v59 = vsel %vm167_vm3, 1.0, %v1279_v51  ;;  %v908_v3 = vsel %vm327_vm7, 1.0, %v1279_v51 }
  0xda   :  { %v173_v0 = vadd.f32 %v896_v59, %v159_v60  ;;  %v505_v59 = vld [vmem:[#allocation8 + $0x60] sm:$0xff]  ;;  %v520_v60 = vld [vmem:[#allocation8 + $0xd8] sm:$0xff] }
  0xdb   :  { %v1402_v43 = vpop.permute.xlu0 %165 }
  0xdc   :  { %v337_v37 = vpop.permute.xlu1 %336  ;;  %vm168_vm3 = vcmp.eq.s32.totalorder %v1402_v43, %v1407_v48 }
  0xdd   :  { %vm341_vm5 = vcmp.eq.s32.totalorder %v337_v37, %v1407_v48  ;;  %v897_v26 = vsel %vm168_vm3, 1.0, %v1279_v51 }
  0xde   :  { %v910_v1 = vsel %vm341_vm5, 1.0, %v1279_v51  ;;  %v174_v34 = vadd.f32 %v897_v26, %v160_v29  ;;  %v630_v26 = vld [vmem:[#allocation10 + $0xb8] sm:$0xff]  ;;  %v627_v29 = vld [vmem:[#allocation10 + $0xa0] sm:$0xff] }
  0xdf   :  { %v347_v5 = vadd.f32 %v910_v1, %v908_v3  ;;  %v501_v1 = vld [vmem:[#allocation8 + $0x40] sm:$0xff]  ;;  %v500_v3 = vld [vmem:[#allocation8 + $0x38] sm:$0xff] }
  0xe0   :  { %v177_v46 = vpop.permute.xlu0 %176 }
  0xe1   :  { %v1398_v38 = vpop.permute.xlu1 %325  ;;  %vm181_vm4 = vcmp.eq.s32.totalorder %v177_v46, %v1407_v48  ;;  %v508_v46 = vld [vmem:[#allocation8 + $0x78] sm:$0xff] }
  0xe2   :  { %v898_v62 = vsel %vm181_vm4, 1.0, %v1279_v51  ;;  %vm328_vm14 = vcmp.eq.s32.totalorder %v1398_v38, %v1407_v48 }
  0xe3   :  { %v187_v4 = vadd.f32 %v898_v62, %v173_v0  ;;  %v909_v16 = vsel %vm328_vm14, 1.0, %v1279_v51  ;;  %v519_v62 = vld [vmem:[#allocation8 + $0xd0] sm:$0xff]  ;;  %v517_v0 = vld [vmem:[#allocation8 + $0xc0] sm:$0xff] }
  0xe5   :  { %v365_v49 = vpop.permute.xlu0 %364 }
  0xe6   :  { %v340_v40 = vpop.permute.xlu1 %339  ;;  %vm369_vm0 = vcmp.eq.s32.totalorder %v365_v49, %v1407_v48  ;;  %v523_v49 = vld [vmem:[#allocation8 + $0xf0] sm:$0xff] }
  0xe7   :  { %vm342_vm13 = vcmp.eq.s32.totalorder %v340_v40, %v1407_v48  ;;  %v914_v17 = vsel %vm369_vm0, 1.0, %v1279_v51 }
  0xe8   :  { %v911_v12 = vsel %vm342_vm13, 1.0, %v1279_v51 }
  0xe9   :  { %v348_v22 = vadd.f32 %v911_v12, %v909_v16  ;;  %v511_v12 = vld [vmem:[#allocation8 + $0x90] sm:$0xff]  ;;  %v509_v16 = vld [vmem:[#allocation8 + $0x80] sm:$0xff] }
  0xea   :  { %v1413_v54 = vpop.permute.xlu0 %193 }
  0xeb   :  { %v351_v42 = vpop.permute.xlu1 %350  ;;  %vm196_vm11 = vcmp.eq.s32.totalorder %v1413_v54, %v1407_v48  ;;  %v522_v54 = vld [vmem:[#allocation8 + $0xe8] sm:$0xff] }
  0xec   :  { %vm355_vm8 = vcmp.eq.s32.totalorder %v351_v42, %v1407_v48  ;;  %v901_v40 = vsel %vm196_vm11, 1.0, %v1279_v51 }
  0xed   :  { %v912_v7 = vsel %vm355_vm8, 1.0, %v1279_v51  ;;  %vm411_vm8 = vcmask 392192  }
  0xee   :  { %v361_v14 = vadd.f32 %v912_v7, %v347_v5  ;;  %v499_v5 = vld [vmem:[#allocation8 + $0x30] sm:$0xff]  ;;  %v498_v7 = vld [vmem:[#allocation8 + $0x28] sm:$0xff] }
  0xef   :  { %v354_v44 = vpop.permute.xlu1 %353  ;;  %v1418_v58 = vpop.permute.xlu0 %381 }
  0xf0   :  { %vm356_vm1 = vcmp.eq.s32.totalorder %v354_v44, %v1407_v48  ;;  %v375_v27 = vadd.f32 %v914_v17, %v361_v14  ;;  %vm384_vm7 = vcmp.eq.s32.totalorder %v1418_v58, %v1407_v48  ;;  %v521_v58 = vld [vmem:[#allocation8 + $0xe0] sm:$0xff]  ;;  %v510_v14 = vld [vmem:[#allocation8 + $0x88] sm:$0xff] }
  0xf1   :  { %v913_v18 = vsel %vm356_vm1, 1.0, %v1279_v51  ;;  %v917_v35 = vsel %vm384_vm7, 1.0, %v1279_v51  ;;  %v493_v17 = vld [vmem:[#allocation8] sm:$0xff] }
  0xf2   :  { %v362_v28 = vadd.f32 %v913_v18, %v348_v22  ;;  %v638_v18 = vld [vmem:[#allocation10 + $0xf8] sm:$0xff] }
  0xf3   :  { %683 = vmatprep.subr.mxu0 %v638_v18  ;;  %v634_v22 = vld [vmem:[#allocation10 + $0xd8] sm:$0xff]  ;;  %v643_v18 = vld [vmem:[#allocation10 + $0x120] sm:$0xff] }
  0xf4   :  { %v1404_v47 = vpop.permute.xlu1 %179  ;;  %v219_v63 = vpop.permute.xlu0 %218 }
  0xf5   :  { %vm223_vm9 = vcmp.eq.s32.totalorder %v219_v63, %v1407_v48  ;;  %v518_v63 = vld [vmem:[#allocation8 + $0xc8] sm:$0xff] }
  0xf6   :  { %v904_v10 = vsel %vm223_vm9, 1.0, %v1279_v51 }
  0xf9   :  { %v191_v50 = vpop.permute.xlu1 %190 }
  0xfa   :  { %vm195_vm6 = vcmp.eq.s32.totalorder %v191_v50, %v1407_v48 }
  0xfb   :  { %v900_v2 = vsel %vm195_vm6, 1.0, %v1279_v51  ;;  %vm182_vm6 = vcmp.eq.s32.totalorder %v1404_v47, %v1407_v48 }
  0xfc   :  { %v201_v8 = vadd.f32 %v900_v2, %v187_v4  ;;  %v899_v31 = vsel %vm182_vm6, 1.0, %v1279_v51  ;;  %v516_v2 = vld [vmem:[#allocation8 + $0xb8] sm:$0xff]  ;;  %v515_v4 = vld [vmem:[#allocation8 + $0xb0] sm:$0xff] }
  0xfd   :  { %v188_v38 = vadd.f32 %v899_v31, %v174_v34  ;;  %v625_v31 = vld [vmem:[#allocation10 + $0x90] sm:$0xff]  ;;  %v622_v34 = vld [vmem:[#allocation10 + $0x78] sm:$0xff] }
  0xfe   :  { %v368_v55 = vpop.permute.xlu1 %367 }
  0xff   :  { %vm370_vm4 = vcmp.eq.s32.totalorder %v368_v55, %v1407_v48  ;;  %v202_v47 = vadd.f32 %v901_v40, %v188_v38  ;;  %v618_v38 = vld [vmem:[#allocation10 + $0x58] sm:$0xff]  ;;  %v616_v40 = vld [vmem:[#allocation10 + $0x48] sm:$0xff] }
 0x100   :  { %v915_v24 = vsel %vm370_vm4, 1.0, %v1279_v51 }
 0x101   :  { %v376_v32 = vadd.f32 %v915_v24, %v362_v28  ;;  %v632_v24 = vld [vmem:[#allocation10 + $0xc8] sm:$0xff] }
 0x102   :  { %v628_v28 = vld [vmem:[#allocation10 + $0xa8] sm:$0xff] }
 0x103   :  { %v379_v61 = vpop.permute.xlu1 %378  ;;  %v390_v41 = vadd.f32 %v917_v35, %v376_v32  ;;  %v624_v32 = vld [vmem:[#allocation10 + $0x88] sm:$0xff]  ;;  %v621_v35 = vld [vmem:[#allocation10 + $0x70] sm:$0xff] }
 0x104   :  { %vm383_vm5 = vcmp.eq.s32.totalorder %v379_v61, %v1407_v48  ;;  %v504_v61 = vld [vmem:[#allocation8 + $0x58] sm:$0xff] }
 0x105   :  { %v916_v25 = vsel %vm383_vm5, 1.0, %v1279_v51 }
 0x106   :  { %v389_v33 = vadd.f32 %v916_v25, %v375_v27  ;;  %v631_v25 = vld [vmem:[#allocation10 + $0xc0] sm:$0xff]  ;;  %v629_v27 = vld [vmem:[#allocation10 + $0xb0] sm:$0xff] }
 0x108   :  { %v205_v6 = vpop.permute.xlu1 %204 }
 0x109   :  { %vm209_vm15 = vcmp.eq.s32.totalorder %v205_v6, %v1407_v48  ;;  %v514_v6 = vld [vmem:[#allocation8 + $0xa8] sm:$0xff] }
 0x10a   :  { %v902_v9 = vsel %vm209_vm15, 1.0, %v1279_v51 }
 0x10b   :  { %v215_v13 = vadd.f32 %v902_v9, %v201_v8  ;;  %v513_v8 = vld [vmem:[#allocation8 + $0xa0] sm:$0xff] }
 0x10c   :  { %v208_v15 = vpop.permute.xlu1 %207  ;;  %v497_v9 = vld [vmem:[#allocation8 + $0x20] sm:$0xff] }
 0x10d   :  { %v229_v19 = vadd.f32 %v904_v10, %v215_v13  ;;  %vm210_vm12 = vcmp.eq.s32.totalorder %v208_v15, %v1407_v48  ;;  %v512_v10 = vld [vmem:[#allocation8 + $0x98] sm:$0xff]  ;;  %v495_v13 = vld [vmem:[#allocation8 + $0x10] sm:$0xff]  ;;  %v494_v15 = vld [vmem:[#allocation8 + $0x8] sm:$0xff] }
 0x10e   :  { %v903_v43 = vsel %vm210_vm12, 1.0, %v1279_v51 }
 0x10f   :  { %1032 = vmatprep.mubr.msk.f32.mxu0 %vm239_vm10, %v229_v19  ;;  %v216_v53 = vadd.f32 %v903_v43, %v202_v47  ;;  %v637_v19 = vld [vmem:[#allocation10 + $0xf0] sm:$0xff]  ;;  %v610_v47 = vld [vmem:[#allocation10 + $0x18] sm:$0xff] }
 0x110   :  { %v613_v43 = vld [vmem:[#allocation10 + $0x30] sm:$0xff] }
 0x111   :  { %v393_v30 = vpop.permute.xlu1 %392 }
 0x112   :  { %vm397_vm9 = vcmp.eq.s32.totalorder %v393_v30, %v1407_v48  ;;  %v626_v30 = vld [vmem:[#allocation10 + $0x98] sm:$0xff] }
 0x113   :  { %v918_v36 = vsel %vm397_vm9, 1.0, %v1279_v51 }
 0x114   :  { %v403_v37 = vadd.f32 %v918_v36, %v389_v33  ;;  %v623_v33 = vld [vmem:[#allocation10 + $0x80] sm:$0xff]  ;;  %v620_v36 = vld [vmem:[#allocation10 + $0x68] sm:$0xff] }
 0x115   :  { %v396_v39 = vpop.permute.xlu1 %395 }
 0x116   :  { %vm398_vm13 = vcmp.eq.s32.totalorder %v396_v39, %v1407_v48  ;;  %1047 = vmatprep.mubr.msk.f32.mxu1 %vm411_vm8, %v403_v37  ;;  %v619_v37 = vld [vmem:[#allocation10 + $0x60] sm:$0xff]  ;;  %v617_v39 = vld [vmem:[#allocation10 + $0x50] sm:$0xff] }
 0x117   :  { %v919_v42 = vsel %vm398_vm13, 1.0, %v1279_v51 }
 0x118   :  { %v404_v44 = vadd.f32 %v919_v42, %v390_v41  ;;  %v615_v41 = vld [vmem:[#allocation10 + $0x40] sm:$0xff]  ;;  %v614_v42 = vld [vmem:[#allocation10 + $0x38] sm:$0xff] }
 0x11a   :  { %v222_v50 = vpop.permute.xlu1 %221  ;;  %1048 = vmatmul.mubr.msk.f32.vlgmr.msra.gmra.mxu1 %vm411_vm8, %v404_v44  ;;  %v612_v44 = vld [vmem:[#allocation10 + $0x28] sm:$0xff] }
 0x11b   :  { %vm224_vm14 = vcmp.eq.s32.totalorder %v222_v50, %v1407_v48  ;;  %944 = vmatpush3.msra.mxu1 %v508_v46  ;;  %v503_v48 = vld [vmem:[#allocation8 + $0x50] sm:$0xff]  ;;  %v611_v46 = vld [vmem:[#allocation10 + $0x20] sm:$0xff]  ;;  %v608_v50 = vld [vmem:[#allocation10 + $0x8] sm:$0xff] }
 0x11c   :  { %v905_v55 = vsel %vm224_vm14, 1.0, %v1279_v51  ;;  %945 = vmatprep.subr.mxu1 %v523_v49  ;;  %v502_v51 = vld [vmem:[#allocation8 + $0x48] sm:$0xff]  ;;  %v609_v49 = vld [vmem:[#allocation10 + $0x10] sm:$0xff] }
 0x11d   :  { %v230_v57 = vadd.f32 %v905_v55, %v216_v53  ;;  %946 = vmatpush3.msra.mxu1 %v507_v52  ;;  %v607_v52 = vld [vmem:[#allocation10] sm:$0xff]  ;;  %v670_v53 = vld [vmem:[#allocation10 + $0x1f8] sm:$0xff]  ;;  %v668_v55 = vld [vmem:[#allocation10 + $0x1e8] sm:$0xff] }
 0x11e   :  { %947 = vmatprep.subr.mxu1 %v522_v54  ;;  %v669_v54 = vld [vmem:[#allocation10 + $0x1f0] sm:$0xff] }
 0x11f   :  { %1033 = vmatmul.mubr.msk.f32.vlgmr.msra.gmra.mxu0 %vm239_vm10, %v230_v57  ;;  %948 = vmatpush3.msra.mxu1 %v506_v56  ;;  %v667_v56 = vld [vmem:[#allocation10 + $0x1e0] sm:$0xff]  ;;  %v666_v57 = vld [vmem:[#allocation10 + $0x1d8] sm:$0xff] }
 0x120   :  { %949 = vmatprep.subr.mxu1 %v521_v58  ;;  %684 = vmatpush1.msra.mxu0 %v637_v19  ;;  %v665_v58 = vld [vmem:[#allocation10 + $0x1d0] sm:$0xff]  ;;  %v642_v19 = vld [vmem:[#allocation10 + $0x118] sm:$0xff] }
 0x121   :  { %950 = vmatpush3.msra.mxu1 %v505_v59  ;;  %685 = vmatprep.subr.mxu0 %v636_v20  ;;  %v664_v59 = vld [vmem:[#allocation10 + $0x1c8] sm:$0xff]  ;;  %v641_v20 = vld [vmem:[#allocation10 + $0x110] sm:$0xff] }
 0x122   :  { %951 = vmatprep.subr.mxu1 %v520_v60  ;;  %686 = vmatpush1.msra.mxu0 %v635_v21  ;;  %v663_v60 = vld [vmem:[#allocation10 + $0x1c0] sm:$0xff]  ;;  %v640_v21 = vld [vmem:[#allocation10 + $0x108] sm:$0xff] }
 0x123   :  { %952 = vmatpush3.msra.mxu1 %v504_v61  ;;  %687 = vmatprep.subr.mxu0 %v634_v22  ;;  %v662_v61 = vld [vmem:[#allocation10 + $0x1b8] sm:$0xff]  ;;  %v639_v22 = vld [vmem:[#allocation10 + $0x100] sm:$0xff] }
 0x124   :  { %953 = vmatprep.subr.mxu1 %v519_v62  ;;  %688 = vmatpush1.msra.mxu0 %v633_v23  ;;  %v661_v62 = vld [vmem:[#allocation10 + $0x1b0] sm:$0xff]  ;;  %v787_v23 = vld [vmem:[#allocation11 + $0xf8] sm:$0xff] }
 0x125   :  { %954 = vmatpush3.msra.mxu1 %v503_v48  ;;  %689 = vmatprep.subr.mxu0 %v632_v24  ;;  %v660_v48 = vld [vmem:[#allocation10 + $0x1a8] sm:$0xff]  ;;  %v771_v24 = vld [vmem:[#allocation11 + $0x78] sm:$0xff] }
 0x126   :  { %955 = vmatprep.subr.mxu1 %v518_v63  ;;  %690 = vmatpush1.msra.mxu0 %v631_v25  ;;  %v659_v63 = vld [vmem:[#allocation10 + $0x1a0] sm:$0xff]  ;;  %v786_v25 = vld [vmem:[#allocation11 + $0xf0] sm:$0xff] }
 0x127   :  { %956 = vmatpush3.msra.mxu1 %v502_v51  ;;  %691 = vmatprep.subr.mxu0 %v630_v26  ;;  %v658_v51 = vld [vmem:[#allocation10 + $0x198] sm:$0xff]  ;;  %v770_v26 = vld [vmem:[#allocation11 + $0x70] sm:$0xff] }
 0x128   :  { %957 = vmatprep.subr.mxu1 %v517_v0  ;;  %692 = vmatpush1.msra.mxu0 %v629_v27  ;;  %v657_v0 = vld [vmem:[#allocation10 + $0x190] sm:$0xff]  ;;  %v785_v27 = vld [vmem:[#allocation11 + $0xe8] sm:$0xff] }
 0x129   :  { %958 = vmatpush3.msra.mxu1 %v501_v1  ;;  %693 = vmatprep.subr.mxu0 %v628_v28  ;;  %v656_v1 = vld [vmem:[#allocation10 + $0x188] sm:$0xff] }
 0x12a   :  { %959 = vmatprep.subr.mxu1 %v516_v2  ;;  %694 = vmatpush1.msra.mxu0 %v627_v29  ;;  %v655_v2 = vld [vmem:[#allocation10 + $0x180] sm:$0xff]  ;;  %v769_v28 = vld [vmem:[#allocation11 + $0x68] sm:$0xff] }
 0x12b   :  { %960 = vmatpush3.msra.mxu1 %v500_v3  ;;  %695 = vmatprep.subr.mxu0 %v626_v30  ;;  %v654_v3 = vld [vmem:[#allocation10 + $0x178] sm:$0xff]  ;;  %v784_v29 = vld [vmem:[#allocation11 + $0xe0] sm:$0xff] }
 0x12c   :  { %961 = vmatprep.subr.mxu1 %v515_v4  ;;  %696 = vmatpush1.msra.mxu0 %v625_v31  ;;  %v653_v4 = vld [vmem:[#allocation10 + $0x170] sm:$0xff]  ;;  %v768_v30 = vld [vmem:[#allocation11 + $0x60] sm:$0xff]  ;;  %v783_v31 = vld [vmem:[#allocation11 + $0xd8] sm:$0xff] }
 0x12d   :  { %962 = vmatpush3.msra.mxu1 %v499_v5  ;;  %697 = vmatprep.subr.mxu0 %v624_v32  ;;  %v652_v5 = vld [vmem:[#allocation10 + $0x168] sm:$0xff]  ;;  %v767_v32 = vld [vmem:[#allocation11 + $0x58] sm:$0xff] }
 0x12e   :  { %963 = vmatprep.subr.mxu1 %v514_v6  ;;  %698 = vmatpush1.msra.mxu0 %v623_v33  ;;  %v651_v6 = vld [vmem:[#allocation10 + $0x160] sm:$0xff]  ;;  %v782_v33 = vld [vmem:[#allocation11 + $0xd0] sm:$0xff] }
 0x12f   :  { %964 = vmatpush3.msra.mxu1 %v498_v7  ;;  %699 = vmatprep.subr.mxu0 %v622_v34  ;;  %v766_v34 = vld [vmem:[#allocation11 + $0x50] sm:$0xff] }
 0x130   :  { %965 = vmatprep.subr.mxu1 %v513_v8  ;;  %700 = vmatpush1.msra.mxu0 %v621_v35  ;;  %v781_v35 = vld [vmem:[#allocation11 + $0xc8] sm:$0xff] }
 0x131   :  { %966 = vmatpush3.msra.mxu1 %v497_v9  ;;  %701 = vmatprep.subr.mxu0 %v620_v36  ;;  %v765_v36 = vld [vmem:[#allocation11 + $0x48] sm:$0xff] }
 0x132   :  { %967 = vmatprep.subr.mxu1 %v512_v10  ;;  %702 = vmatpush1.msra.mxu0 %v619_v37  ;;  %v780_v37 = vld [vmem:[#allocation11 + $0xc0] sm:$0xff] }
 0x133   :  { %968 = vmatpush3.msra.mxu1 %v496_v11  ;;  %703 = vmatprep.subr.mxu0 %v618_v38  ;;  %v650_v11 = vld [vmem:[#allocation10 + $0x158] sm:$0xff]  ;;  %v764_v38 = vld [vmem:[#allocation11 + $0x40] sm:$0xff] }
 0x134   :  { %969 = vmatprep.subr.mxu1 %v511_v12  ;;  %704 = vmatpush1.msra.mxu0 %v617_v39  ;;  %v649_v12 = vld [vmem:[#allocation10 + $0x150] sm:$0xff]  ;;  %v779_v39 = vld [vmem:[#allocation11 + $0xb8] sm:$0xff] }
 0x135   :  { %970 = vmatpush3.msra.mxu1 %v495_v13  ;;  %705 = vmatprep.subr.mxu0 %v616_v40  ;;  %v648_v13 = vld [vmem:[#allocation10 + $0x148] sm:$0xff]  ;;  %v763_v40 = vld [vmem:[#allocation11 + $0x38] sm:$0xff] }
 0x136   :  { %971 = vmatprep.subr.mxu1 %v510_v14  ;;  %706 = vmatpush1.msra.mxu0 %v615_v41  ;;  %v647_v14 = vld [vmem:[#allocation10 + $0x140] sm:$0xff]  ;;  %v778_v41 = vld [vmem:[#allocation11 + $0xb0] sm:$0xff] }
 0x137   :  { %972 = vmatpush3.msra.mxu1 %v494_v15  ;;  %707 = vmatprep.subr.mxu0 %v614_v42  ;;  %v646_v15 = vld [vmem:[#allocation10 + $0x138] sm:$0xff]  ;;  %v762_v42 = vld [vmem:[#allocation11 + $0x30] sm:$0xff] }
 0x138   :  { %973 = vmatprep.subr.mxu1 %v509_v16  ;;  %708 = vmatpush1.msra.mxu0 %v613_v43  ;;  %v645_v16 = vld [vmem:[#allocation10 + $0x130] sm:$0xff]  ;;  %v777_v43 = vld [vmem:[#allocation11 + $0xa8] sm:$0xff] }
 0x139   :  { %974 = vmatpush3.msra.mxu1 %v493_v17  ;;  %709 = vmatprep.subr.mxu0 %v612_v44  ;;  %v644_v17 = vld [vmem:[#allocation10 + $0x128] sm:$0xff] }
 0x13a   :  { %710 = vmatpush1.msra.mxu0 %v611_v46  ;;  %981 = vmatprep.subr.mxu1 %v787_v23  ;;  %v761_v44 = vld [vmem:[#allocation11 + $0x28] sm:$0xff]  ;;  %v776_v46 = vld [vmem:[#allocation11 + $0xa0] sm:$0xff] }
 0x13b   :  { %711 = vmatprep.subr.mxu0 %v610_v47  ;;  %v760_v47 = vld [vmem:[#allocation11 + $0x20] sm:$0xff] }
 0x13c   :  { %712 = vmatpush1.msra.mxu0 %v609_v49 }
 0x13d   :  { %713 = vmatprep.subr.mxu0 %v608_v50 }
 0x13e   :  { %714 = vmatpush1.msra.mxu0 %v607_v52 }
 0x13f   :  { %715 = vmatprep.subr.mxu0 %v670_v53 }
 0x140   :  { %716 = vmatpush2.msra.mxu0 %v669_v54 }
 0x141   :  { %717 = vmatprep.subr.mxu0 %v668_v55  ;;  %v922_v55 = vld [vmem:[%s1506_s4] ss:$0 sm:$0xff] }
 0x142   :  { %718 = vmatpush2.msra.mxu0 %v667_v56 }
 0x143   :  { %719 = vmatprep.subr.mxu0 %v666_v57 }
 0x144   :  { %720 = vmatpush2.msra.mxu0 %v665_v58 }
 0x145   :  { %721 = vmatprep.subr.mxu0 %v664_v59  ;;  %v775_v59 = vld [vmem:[#allocation11 + $0x98] sm:$0xff] }
 0x146   :  { %722 = vmatpush2.msra.mxu0 %v663_v60  ;;  %v759_v60 = vld [vmem:[#allocation11 + $0x18] sm:$0xff] }
 0x147   :  { %723 = vmatprep.subr.mxu0 %v662_v61  ;;  %v774_v61 = vld [vmem:[#allocation11 + $0x90] sm:$0xff] }
 0x148   :  { %724 = vmatpush2.msra.mxu0 %v661_v62  ;;  %v758_v62 = vld [vmem:[#allocation11 + $0x10] sm:$0xff] }
 0x149   :  { %725 = vmatprep.subr.mxu0 %v660_v48  ;;  %v773_v48 = vld [vmem:[#allocation11 + $0x88] sm:$0xff] }
 0x14a   :  { %726 = vmatpush2.msra.mxu0 %v659_v63  ;;  %v757_v63 = vld [vmem:[#allocation11 + $0x8] sm:$0xff] }
 0x14b   :  { %727 = vmatprep.subr.mxu0 %v658_v51  ;;  %v772_v51 = vld [vmem:[#allocation11 + $0x80] sm:$0xff] }
 0x14c   :  { %728 = vmatpush2.msra.mxu0 %v657_v0  ;;  %v756_v0 = vld [vmem:[#allocation11] sm:$0xff] }
 0x14d   :  { %729 = vmatprep.subr.mxu0 %v656_v1  ;;  %v674_v1 = vshrl.u32 %v117_v45, 7  ;;  %v923_v45 = vld [vmem:[%s1510_s8] ss:$0 sm:$0xff] }
 0x14e   :  { %730 = vmatpush2.msra.mxu0 %v655_v2 }
 0x14f   :  { %731 = vmatprep.subr.mxu0 %v654_v3  ;;  %v675_v2 = vsub.s32 0, %v674_v1  ;;  %v671_v3 = vld [vmem:[%s1508_s6] sm:$0x3]  ;;  %s1280_s6 = smov [#allocation13]  }
 0x150   :  { %732 = vmatpush2.msra.mxu0 %v653_v4  ;;  %v679_v4 = vsub.s32 1, %v674_v1  ;;  %s878_s21 = sshll.u32 %s1280_s6, 4  ;;  %s879_s21 = int_to_ptr.vmem [resolvable:$true] %s878_s21 }
 0x151   :  { %733 = vmatprep.subr.mxu0 %v652_v5  ;;  %v676_v5 = vrot.slane %v671_v3, %v675_v2  ;;  %s1225_s22 = scalar_lea.vmem %s879_s21, 128  ;;  %p1230_p3 = scmp.lt.s32.totalorder %s879_s21, %s879_s21 }
 0x152   :  { %734 = vmatpush2.msra.mxu0 %v651_v6  ;;  %v680_v6 = vrot.slane %v671_v3, %v679_v4  ;;  %p1226_p2 = scmp.ne.s32.totalorder %s879_s21, %s1225_s22  ;;  %p1231_p4 = scmp.lt.s32.totalorder %s1225_s22, %s1225_s22 }
 0x153   :  { %735 = vmatprep.subr.mxu0 %v650_v11 }
 0x154   :  { %736 = vmatpush2.msra.mxu0 %v649_v12  ;;  %p1232_p5 = por %p1231_p4, %p1230_p3 }
 0x155   :  { %737 = vmatprep.subr.mxu0 %v648_v13 }
 0x156   :  { %738 = vmatpush2.msra.mxu0 %v647_v14  ;;  %p1233_p6 = pnand %p1232_p5, %p1226_p2 }
 0x157   :  { %739 = vmatprep.subr.mxu0 %v646_v15 }
 0x158   :  { %740 = vmatpush2.msra.mxu0 %v645_v16 }
 0x159   :  { %741 = vmatprep.subr.mxu0 %v644_v17 }
 0x15a   :  { %742 = vmatpush2.msra.mxu0 %v643_v18 }
 0x15b   :  { %743 = vmatprep.subr.mxu0 %v642_v19 }
 0x15c   :  { %744 = vmatpush2.msra.mxu0 %v641_v20 }
 0x15d   :  { %745 = vmatprep.subr.mxu0 %v640_v21 }
 0x15e   :  { %746 = vmatpush2.msra.mxu0 %v639_v22 }
 0x1da   :  { %v1049_v7 = vpop.f32.mrf.mxu1 }
 0x1dc   :  { %v484_v8 = vpop.f32.mrf.mxu1 }
 0x1dd   :  { %596 = vmatprep.mubr.f32.mxu1 %v484_v8 }
 0x1df   :  { %v1034_v9 = vpop.f32.mrf.mxu0 }
 0x1e1   :  { %v312_v10 = vpop.f32.mrf.mxu0 }
 0x1e2   :  { %597 = vmatmul.mubr.f32.vlgmr.msra.gmra.mxu1 %v312_v10 }
 0x1e3   :  { %601 = vmatprep.mubr.f32.mxu1 %v1049_v7  ;;  %982 = vmatpush3.msra.mxu1 %v771_v24 }
 0x1e4   :  { %983 = vmatprep.subr.mxu1 %v786_v25 }
 0x1e5   :  { %984 = vmatpush3.msra.mxu1 %v770_v26 }
 0x1e6   :  { %602 = vmatmul.mubr.f32.gmra.mxu1 %v1034_v9  ;;  %985 = vmatprep.subr.mxu1 %v785_v27 }
 0x1e7   :  { %986 = vmatpush3.msra.mxu1 %v769_v28 }
 0x1e8   :  { %987 = vmatprep.subr.mxu1 %v784_v29 }
 0x1e9   :  { %988 = vmatpush3.msra.mxu1 %v768_v30 }
 0x1ea   :  { %989 = vmatprep.subr.mxu1 %v783_v31 }
 0x1eb   :  { %990 = vmatpush3.msra.mxu1 %v767_v32 }
 0x1ec   :  { %991 = vmatprep.subr.mxu1 %v782_v33 }
 0x1ed   :  { %992 = vmatpush3.msra.mxu1 %v766_v34 }
 0x1ee   :  { %993 = vmatprep.subr.mxu1 %v781_v35 }
 0x1ef   :  { %994 = vmatpush3.msra.mxu1 %v765_v36 }
 0x1f0   :  { %995 = vmatprep.subr.mxu1 %v780_v37 }
 0x1f1   :  { %996 = vmatpush3.msra.mxu1 %v764_v38 }
 0x1f2   :  { %997 = vmatprep.subr.mxu1 %v779_v39 }
 0x1f3   :  { %998 = vmatpush3.msra.mxu1 %v763_v40 }
 0x1f4   :  { %999 = vmatprep.subr.mxu1 %v778_v41 }
 0x1f5   :  { %1000 = vmatpush3.msra.mxu1 %v762_v42 }
 0x1f6   :  { %1001 = vmatprep.subr.mxu1 %v777_v43 }
 0x1f7   :  { %1002 = vmatpush3.msra.mxu1 %v761_v44 }
 0x1f8   :  { %1003 = vmatprep.subr.mxu1 %v776_v46 }
 0x1f9   :  { %1004 = vmatpush3.msra.mxu1 %v760_v47 }
 0x1fa   :  { %1005 = vmatprep.subr.mxu1 %v775_v59 }
 0x1fb   :  { %1006 = vmatpush3.msra.mxu1 %v759_v60 }
 0x1fc   :  { %1007 = vmatprep.subr.mxu1 %v774_v61 }
 0x1fd   :  { %1008 = vmatpush3.msra.mxu1 %v758_v62 }
 0x1fe   :  { %1009 = vmatprep.subr.mxu1 %v773_v48 }
 0x1ff   :  { %1010 = vmatpush3.msra.mxu1 %v757_v63 }
 0x200   :  { %1011 = vmatprep.subr.mxu1 %v772_v51 }
 0x201   :  { %1012 = vmatpush3.msra.mxu1 %v756_v0 }
 0x2a2   :  { %v975_v49 = vpop.f32.mrf.mxu1 }
 0x2a4   :  { %v976_v50 = vpop.f32.mrf.mxu1 }
 0x2a5   :  { %v977_v53 = vadd.f32 %v976_v50, %v975_v49 }
 0x2a6   :  { %v978_v52 = vpop.f32.mrf.mxu1 }
 0x2a7   :  { %v599_v58 = vadd.f32 %v977_v53, %v922_v55 }
 0x2a8   :  { %v979_v54 = vpop.f32.mrf.mxu1 }
 0x2a9   :  { %v980_v56 = vadd.f32 %v979_v54, %v978_v52 }
 0x2ab   :  { %v604_v57 = vadd.f32 %v980_v56, %v922_v55 }
 0x2ad   :  { %747 = vmatprep.mubr.f32.mxu0 %v604_v57 }
 0x2ae   :  { %748 = vmatmul.mubr.f32.vlgmr.msra.gmra.mxu0 %v599_v58 }
 0x36e   :  { %v749_v7 = vpop.f32.mrf.mxu0 }
 0x36f   :  { %v750_v8 = vadd.f32 %v749_v7, %v676_v5 }
 0x370   :  { %v751_v9 = vpop.f32.mrf.mxu0 }
 0x371   :  { %v752_v10 = vadd.f32 %v751_v9, %v680_v6  ;;  %v754_v12 = vmax.f32 %v750_v8, 0.0 }
 0x373   :  { %v755_v11 = vmax.f32 %v752_v10, 0.0 }
 0x375   :  { %859 = vmatprep.mubr.f32.mxu1 %v755_v11 }
 0x376   :  { %860 = vmatmul.mubr.f32.vlgmr.msra.gmra.mxu1 %v754_v12 }
 0x436   :  { %v1013_v13 = vpop.f32.mrf.mxu1 }
 0x438   :  { %v1014_v14 = vpop.f32.mrf.mxu1 }
 0x439   :  { %v1015_v15 = vadd.f32 %v1014_v14, %v1013_v13 }
 0x43b   :  { %v862_v16 = vadd.f32 %v1015_v15, %v923_v45 }
 0x43d   :  { %v924_v17 = vmul.f32 -1.442695, %v862_v16 }
 0x43f   :  { %1101 = vpow2.f32 %v924_v17 }
 0x44c   :  { %v1102_v18 = vpop.eup %1101 }
 0x44d   :  { %v868_v19 = vadd.f32 1.0, %v1102_v18 }
 0x44f   :  { %1103 = vrcp.f32 %v868_v19 }
 0x45c   :  { %v1104_v20 = vpop.eup %1103 }
 0x45d   :  { %871 = vst [vmem:[#allocation13] sm:$0xff] %v1104_v20 }
 0x45e   :  { %1236 = shalt.err (!%p1233_p6)
}
 0x45f   :  { %881 = dma.vmem_to_hbm [thread:$0]  %s879_s21, 128, %s1511_s9, [#allocation4]  }
 0x460   :  { %1253 = dma.done.wait [#allocation4], 128  }
 0x461   :  { %1254 = vsyncadd [#allocation4], 4294967168 }
 0x462   :  { %885 = vsyncpa [#allocation3], 1 }
 0x463   :  { %886 = vsyncpa [#allocation6], 1 }
 0x464   :  { %887 = vsyncpa [#allocation9], 1 }
 0x465   :  { %888 = vsyncpa [#allocation12], 1 }
 0x466   :  { %889 = vsyncpa [#allocation4], 1 }

// kernel: tpu_custom_call.1
= control target key start
LH: loop header
LB: loop body
LE: loop exit
PB: predicated region body
PF: predicated region fallthrough
CT: control target
= control target key end

     0   :  { %14 = vsyncpa [#allocation3], 0  ;;  %s1502_s0 = inlined_call_operand.hbm [shape: s32[2,8,14], index: 0, kind: input, shape index: {}]   ;;  %s1503_s1 = inlined_call_operand.hbm [shape: f32[64,128], index: 1, kind: input, shape index: {}]   ;;  %s1504_s2 = inlined_call_operand.hbm [shape: f32[48,128], index: 2, kind: input, shape index: {}]   ;;  %s1505_s3 = inlined_call_operand.hbm [shape: f32[256,128], index: 3, kind: input, shape index: {}]   ;;  %s1506_s4 = inlined_call_operand.vmem [shape: f32[1,128], index: 4, kind: input, shape index: {}]   ;;  %s1507_s5 = inlined_call_operand.hbm [shape: f32[256,256], index: 5, kind: input, shape index: {}]   ;;  %s1508_s6 = inlined_call_operand.vmem [shape: f32[1,256], index: 6, kind: input, shape index: {}]   ;;  %s1509_s7 = inlined_call_operand.hbm [shape: f32[256,128], index: 7, kind: input, shape index: {}]   ;;  %s1510_s8 = inlined_call_operand.vmem [shape: f32[1,128], index: 8, kind: input, shape index: {}]   ;;  %s1511_s9 = inlined_call_operand.hbm [shape: f32[8,128], index: 9, kind: output, shape index: {}]  }
   0x1   :  { %15 = vsyncpa [#allocation6], 0 }
   0x2   :  { %16 = vsyncpa [#allocation9], 0 }
   0x3   :  { %17 = vsyncpa [#allocation12], 0 }
   0x4   :  { %18 = vsyncpa [#allocation4], 0  ;;  %s1255_s30 = smov [#allocation5]   ;;  %s1256_s11 = smov [#allocation8]  }
   0x5   :  { %s36_s10 = sshll.u32 %s1255_s30, 4  ;;  %s60_s12 = sshll.u32 %s1256_s11, 4  ;;  %s37_s10 = int_to_ptr.vmem [resolvable:$true] %s36_s10  ;;  %s61_s12 = int_to_ptr.vmem [resolvable:$true] %s60_s12 }
   0x6   :  { %s1113_s13 = scalar_lea.vmem %s37_s10, 1024  ;;  %p1118_p1 = scmp.lt.s32.totalorder %s37_s10, %s37_s10 }
   0x7   :  { %p1114_p0 = scmp.ne.s32.totalorder %s37_s10, %s1113_s13  ;;  %p1119_p2 = scmp.lt.s32.totalorder %s1113_s13, %s1113_s13 }
   0x9   :  { %p1120_p3 = por %p1119_p2, %p1118_p1 }
   0xb   :  { %p1121_p4 = pnand %p1120_p3, %p1114_p0 }
   0xd   :  { %1124 = shalt.err (!%p1121_p4)
}
   0xe   :  { %s1257_s14 = smov 128   ;;  %s1258_s15 = smov 8  }
   0xf   :  { %42 = dma.hbm_to_vmem [thread:$0]  %s1503_s1, 1024, %s37_s10, [#allocation6], %s1257_s14, %s1257_s14, %s1258_s15  }
  0x10   :  { %s1133_s18 = scalar_lea.vmem %s61_s12, 4096  ;;  %p1138_p6 = scmp.lt.s32.totalorder %s61_s12, %s61_s12 }
  0x11   :  { %p1134_p5 = scmp.ne.s32.totalorder %s61_s12, %s1133_s18  ;;  %p1139_p7 = scmp.lt.s32.totalorder %s1133_s18, %s1133_s18 }
  0x13   :  { %p1140_p8 = por %p1139_p7, %p1138_p6 }
  0x15   :  { %p1141_p9 = pnand %p1140_p8, %p1134_p5 }
  0x17   :  { %1144 = shalt.err (!%p1141_p9)
}
  0x18   :  { %66 = dma.hbm_to_vmem [thread:$0]  %s1505_s3, 4096, %s61_s12, [#allocation9], %s1257_s14, %s1257_s14, %s1258_s15  }
  0x19   :  { %s1259_s21 = smov [#allocation2]   ;;  %s1260_s23 = smov [#allocation7]  }
  0x1a   :  { %s24_s22 = sshll.u32 %s1259_s21, 4  ;;  %s48_s24 = sshll.u32 %s1260_s23, 4  ;;  %s25_s22 = int_to_ptr.vmem [resolvable:$true] %s24_s22  ;;  %s49_s24 = int_to_ptr.vmem [resolvable:$true] %s48_s24 }
  0x1b   :  { %s1153_s1 = scalar_lea.vmem %s25_s22, 256  ;;  %p1158_p11 = scmp.lt.s32.totalorder %s25_s22, %s25_s22 }
  0x1c   :  { %p1154_p10 = scmp.ne.s32.totalorder %s25_s22, %s1153_s1  ;;  %p1159_p12 = scmp.lt.s32.totalorder %s1153_s1, %s1153_s1 }
  0x1e   :  { %p1160_p13 = por %p1159_p12, %p1158_p11 }
  0x20   :  { %p1161_p0 = pnand %p1160_p13, %p1154_p10 }
  0x22   :  { %1164 = shalt.err (!%p1161_p0)
}
  0x23   :  { %30 = dma.hbm_to_vmem [thread:$0]  %s1502_s0, 256, %s25_s22, [#allocation3], %s1257_s14, %s1257_s14, %s1258_s15  }
  0x24   :  { %s1173_s3 = scalar_lea.vmem %s49_s24, 768  ;;  %p1178_p2 = scmp.lt.s32.totalorder %s49_s24, %s49_s24 }
  0x25   :  { %p1174_p1 = scmp.ne.s32.totalorder %s49_s24, %s1173_s3  ;;  %p1179_p3 = scmp.lt.s32.totalorder %s1173_s3, %s1173_s3 }
  0x27   :  { %p1180_p4 = por %p1179_p3, %p1178_p2 }
  0x29   :  { %p1181_p5 = pnand %p1180_p4, %p1174_p1 }
  0x2b   :  { %1184 = shalt.err (!%p1181_p5)
}
  0x2c   :  { %54 = dma.hbm_to_vmem [thread:$0]  %s1504_s2, 768, %s49_s24, [#allocation6], %s1257_s14, %s1257_s14, %s1258_s15  }
  0x2d   :  { %s1261_s29 = smov [#allocation10]  }
  0x2e   :  { %s74_s30 = sshll.u32 %s1261_s29, 4  ;;  %s75_s30 = int_to_ptr.vmem [resolvable:$true] %s74_s30 }
  0x2f   :  { %s1193_s10 = scalar_lea.vmem %s75_s30, 8192  ;;  %p1198_p7 = scmp.lt.s32.totalorder %s75_s30, %s75_s30 }
  0x30   :  { %p1194_p6 = scmp.ne.s32.totalorder %s75_s30, %s1193_s10  ;;  %p1199_p8 = scmp.lt.s32.totalorder %s1193_s10, %s1193_s10 }
  0x32   :  { %p1200_p9 = por %p1199_p8, %p1198_p7 }
  0x34   :  { %p1201_p10 = pnand %p1200_p9, %p1194_p6 }
  0x36   :  { %1204 = shalt.err (!%p1201_p10)
}
  0x37   :  { %s1262_s0 = smov 256   ;;  %s1263_s11 = smov 16  }
  0x38   :  { %80 = dma.hbm_to_vmem [thread:$0]  %s1507_s5, 8192, %s75_s30, [#allocation9], %s1262_s0, %s1262_s0, %s1263_s11  }
  0x39   :  { %s1264_s16 = smov [#allocation11]  }
  0x3a   :  { %s88_s17 = sshll.u32 %s1264_s16, 4  ;;  %s89_s17 = int_to_ptr.vmem [resolvable:$true] %s88_s17 }
  0x3b   :  { %s1213_s2 = scalar_lea.vmem %s89_s17, 4096  ;;  %p1218_p12 = scmp.lt.s32.totalorder %s89_s17, %s89_s17 }
  0x3c   :  { %p1214_p11 = scmp.ne.s32.totalorder %s89_s17, %s1213_s2  ;;  %p1219_p13 = scmp.lt.s32.totalorder %s1213_s2, %s1213_s2 }
  0x3e   :  { %p1220_p0 = por %p1219_p13, %p1218_p12 }
  0x40   :  { %p1221_p1 = pnand %p1220_p0, %p1214_p11 }
  0x42   :  { %1224 = shalt.err (!%p1221_p1)
}
  0x43   :  { %94 = dma.hbm_to_vmem [thread:$0]  %s1509_s7, 4096, %s89_s17, [#allocation12], %s1257_s14, %s1257_s14, %s1258_s15  }
  0x44   :  { %1245 = dma.done.wait [#allocation3], 256  }
  0x45   :  { %1246 = vsyncadd [#allocation3], 4294967040 }
  0x46   :  { %1247 = dma.done.wait [#allocation6], 1792  }
  0x47   :  { %1248 = vsyncadd [#allocation6], 4294965504 }
  0x48   :  { %1249 = dma.done.wait [#allocation9], 12288  }
  0x49   :  { %1250 = vsyncadd [#allocation9], 4294955008 }
  0x4a   :  { %1251 = dma.done.wait [#allocation12], 4096  }
  0x4b   :  { %1252 = vsyncadd [#allocation12], 4294963200  ;;  %v1265_v0 = vmov 0   ;;  %v1364_v1 = vld [vmem:[#allocation2 + $0x8] sm:$0xff]  ;;  %v1366_v2 = vld [vmem:[#allocation2] sm:$0xff]  ;;  %v1266_v3 = vmov 1   ;;  %v117_v45 = vlaneseq }
  0x4c   :  { %1078 = vset.pattern.permute.xlu1 %v1265_v0  ;;  %1076 = vset.pattern.permute.xlu0 %v1265_v0  ;;  %v1267_v4 = vmov 2   ;;  %v1268_v5 = vmov 8   ;;  %v1269_v6 = vmov 3   ;;  %v1270_v7 = vmov 9   ;;  %v410_v16 = vld [vmem:[#allocation7 + $0x28] sm:$0xff]  ;;  %v238_v17 = vld [vmem:[#allocation5 + $0x38] sm:$0xff] }
  0x4d   :  { %123 = vperm.xlu1 %1078, %v1364_v1   ;;  %120 = vperm.xlu0 %1076, %v1366_v2   ;;  %v1271_v8 = vmov 4   ;;  %v1272_v9 = vmov 11   ;;  %v1273_v10 = vmov 5   ;;  %v1274_v11 = vmov 10   ;;  %v409_v18 = vld [vmem:[#allocation7 + $0x20] sm:$0xff]  ;;  %v237_v19 = vld [vmem:[#allocation5 + $0x30] sm:$0xff] }
  0x4e   :  { %v1275_v12 = vmov 12   ;;  %v1276_v13 = vmov 7   ;;  %v1277_v14 = vmov 13   ;;  %v1278_v15 = vmov 6   ;;  %1035 = vmatprep.subr.mxu1 %v410_v16  ;;  %1016 = vmatprep.subr.mxu0 %v238_v17  ;;  %v408_v20 = vld [vmem:[#allocation7 + $0x18] sm:$0xff]  ;;  %v236_v21 = vld [vmem:[#allocation5 + $0x28] sm:$0xff] }
  0x4f   :  { %1036 = vmatpush3.msra.mxu1 %v410_v16  ;;  %1017 = vmatpush3.msra.mxu0 %v238_v17  ;;  %v407_v22 = vld [vmem:[#allocation7 + $0x10] sm:$0xff]  ;;  %v235_v23 = vld [vmem:[#allocation5 + $0x20] sm:$0xff]  ;;  %v406_v24 = vld [vmem:[#allocation7 + $0x8] sm:$0xff]  ;;  %v1407_v48 = vand.u32 127, %v117_v45  ;;  %v1279_v51 = vmov 0.0   ;;  %vm239_vm10 = vcmask 523264  }
  0x50   :  { %1037 = vmatprep.subr.mxu1 %v409_v18  ;;  %1018 = vmatprep.subr.mxu0 %v237_v19  ;;  %v234_v25 = vld [vmem:[#allocation5 + $0x18] sm:$0xff]  ;;  %v405_v26 = vld [vmem:[#allocation7] sm:$0xff]  ;;  %v233_v27 = vld [vmem:[#allocation5 + $0x10] sm:$0xff] }
  0x51   :  { %1079 = vset.pattern.permute.xlu1 %v1266_v3  ;;  %1077 = vset.pattern.permute.xlu0 %v1266_v3  ;;  %v232_v28 = vld [vmem:[#allocation5 + $0x8] sm:$0xff]  ;;  %v231_v29 = vld [vmem:[#allocation5] sm:$0xff] }
  0x52   :  { %137 = vperm.xlu1 %1079, %v1364_v1   ;;  %134 = vperm.xlu0 %1077, %v1366_v2   ;;  %v524_v30 = vld [vmem:[#allocation8 + $0xf8] sm:$0xff] }
  0x53   :  { %1038 = vmatpush3.msra.mxu1 %v409_v18  ;;  %1019 = vmatpush3.msra.mxu0 %v237_v19 }
  0x54   :  { %1039 = vmatprep.subr.mxu1 %v408_v20  ;;  %1020 = vmatprep.subr.mxu0 %v236_v21 }
  0x55   :  { %1040 = vmatpush3.msra.mxu1 %v408_v20  ;;  %1021 = vmatpush3.msra.mxu0 %v236_v21 }
  0x56   :  { %1080 = vset.pattern.permute.xlu1 %v1267_v4  ;;  %1081 = vset.pattern.permute.xlu0 %v1267_v4 }
  0x57   :  { %148 = vperm.xlu1 %1080, %v1366_v2   ;;  %151 = vperm.xlu0 %1081, %v1364_v1  }
  0x58   :  { %1041 = vmatprep.subr.mxu1 %v407_v22  ;;  %1022 = vmatprep.subr.mxu0 %v235_v23 }
  0x59   :  { %1042 = vmatpush3.msra.mxu1 %v407_v22  ;;  %1023 = vmatpush3.msra.mxu0 %v235_v23 }
  0x5a   :  { %1043 = vmatprep.subr.mxu1 %v406_v24  ;;  %1024 = vmatprep.subr.mxu0 %v234_v25 }
  0x5b   :  { %1082 = vset.pattern.permute.xlu1 %v1268_v5  ;;  %1084 = vset.pattern.permute.xlu0 %v1269_v6 }
  0x5c   :  { %322 = vperm.xlu1 %1082, %v1366_v2   ;;  %162 = vperm.xlu0 %1084, %v1366_v2  }
  0x5d   :  { %1044 = vmatpush3.msra.mxu1 %v406_v24  ;;  %1025 = vmatpush3.msra.mxu0 %v234_v25 }
  0x5e   :  { %1045 = vmatprep.subr.mxu1 %v405_v26  ;;  %1026 = vmatprep.subr.mxu0 %v233_v27 }
  0x5f   :  { %1046 = vmatpush3.msra.mxu1 %v405_v26  ;;  %1027 = vmatpush3.msra.mxu0 %v233_v27 }
  0x60   :  { %1083 = vset.pattern.permute.xlu1 %v1270_v7  ;;  %165 = vperm.xlu0 %1084, %v1364_v1  }
  0x61   :  { %336 = vperm.xlu1 %1083, %v1366_v2   ;;  %1028 = vmatprep.subr.mxu0 %v232_v28 }
  0x62   :  { %1029 = vmatpush3.msra.mxu0 %v232_v28  ;;  %943 = vmatprep.subr.mxu1 %v524_v30 }
  0x63   :  { %1030 = vmatprep.subr.mxu0 %v231_v29 }
  0x64   :  { %1088 = vset.pattern.permute.xlu0 %v1271_v8  ;;  %1031 = vmatpush3.msra.mxu0 %v231_v29 }
  0x65   :  { %1085 = vset.pattern.permute.xlu1 %v1268_v5  ;;  %176 = vperm.xlu0 %1088, %v1366_v2  }
  0x66   :  { %325 = vperm.xlu1 %1085, %v1364_v1  }
  0x69   :  { %1090 = vset.pattern.permute.xlu0 %v1272_v9 }
  0x6a   :  { %1086 = vset.pattern.permute.xlu1 %v1270_v7  ;;  %364 = vperm.xlu0 %1090, %v1366_v2  }
  0x6b   :  { %339 = vperm.xlu1 %1086, %v1364_v1  }
  0x6e   :  { %1093 = vset.pattern.permute.xlu0 %v1273_v10 }
  0x6f   :  { %1087 = vset.pattern.permute.xlu1 %v1274_v11  ;;  %193 = vperm.xlu0 %1093, %v1364_v1  }
  0x70   :  { %350 = vperm.xlu1 %1087, %v1366_v2  }
  0x73   :  { %1096 = vset.pattern.permute.xlu0 %v1275_v12 }
  0x74   :  { %353 = vperm.xlu1 %1087, %v1364_v1   ;;  %381 = vperm.xlu0 %1096, %v1364_v1  }
  0x78   :  { %1089 = vset.pattern.permute.xlu1 %v1271_v8  ;;  %1098 = vset.pattern.permute.xlu0 %v1276_v13 }
  0x79   :  { %179 = vperm.xlu1 %1089, %v1364_v1   ;;  %218 = vperm.xlu0 %1098, %v1366_v2  }
  0x7d   :  { %1091 = vset.pattern.permute.xlu1 %v1273_v10  ;;  %1100 = vset.pattern.permute.xlu0 %v1277_v14 }
  0x7e   :  { %190 = vperm.xlu1 %1091, %v1366_v2  }
  0x82   :  { %1092 = vset.pattern.permute.xlu1 %v1272_v9 }
  0x83   :  { %367 = vperm.xlu1 %1092, %v1364_v1  }
  0x87   :  { %1094 = vset.pattern.permute.xlu1 %v1275_v12 }
  0x88   :  { %378 = vperm.xlu1 %1094, %v1366_v2  }
  0x8c   :  { %1095 = vset.pattern.permute.xlu1 %v1278_v15 }
  0x8d   :  { %204 = vperm.xlu1 %1095, %v1366_v2  }
  0x91   :  { %207 = vperm.xlu1 %1095, %v1364_v1  }
  0x95   :  { %1097 = vset.pattern.permute.xlu1 %v1277_v14 }
  0x96   :  { %392 = vperm.xlu1 %1097, %v1366_v2  }
  0x9a   :  { %395 = vperm.xlu1 %1097, %v1364_v1  }
  0x9e   :  { %1099 = vset.pattern.permute.xlu1 %v1276_v13 }
  0x9f   :  { %221 = vperm.xlu1 %1099, %v1364_v1  }
  0xc8   :  { %v1396_v31 = vpop.permute.xlu1 %123  ;;  %v121_v34 = vpop.permute.xlu0 %120 }
  0xc9   :  { %vm125_vm0 = vcmp.eq.s32.totalorder %v121_v34, %v1407_v48  ;;  %vm126_vm11 = vcmp.eq.s32.totalorder %v1396_v31, %v1407_v48 }
  0xca   :  { %v890_v52 = vsel %vm125_vm0, 1.0, %v1279_v51  ;;  %v891_v20 = vsel %vm126_vm11, 1.0, %v1279_v51 }
  0xcd   :  { %v138_v32 = vpop.permute.xlu1 %137  ;;  %v135_v36 = vpop.permute.xlu0 %134 }
  0xce   :  { %vm139_vm1 = vcmp.eq.s32.totalorder %v135_v36, %v1407_v48  ;;  %vm140_vm12 = vcmp.eq.s32.totalorder %v138_v32, %v1407_v48 }
  0xcf   :  { %v892_v53 = vsel %vm139_vm1, 1.0, %v1279_v51  ;;  %v893_v11 = vsel %vm140_vm12, 1.0, %v1279_v51 }
  0xd0   :  { %v145_v56 = vadd.f32 %v892_v53, %v890_v52  ;;  %v146_v23 = vadd.f32 %v893_v11, %v891_v20  ;;  %v507_v52 = vld [vmem:[#allocation8 + $0x70] sm:$0xff]  ;;  %v496_v11 = vld [vmem:[#allocation8 + $0x18] sm:$0xff]  ;;  %v636_v20 = vld [vmem:[#allocation10 + $0xe8] sm:$0xff] }
  0xd2   :  { %v149_v33 = vpop.permute.xlu1 %148  ;;  %v1400_v39 = vpop.permute.xlu0 %151 }
  0xd3   :  { %vm153_vm2 = vcmp.eq.s32.totalorder %v149_v33, %v1407_v48 }
  0xd4   :  { %v894_v57 = vsel %vm153_vm2, 1.0, %v1279_v51  ;;  %vm154_vm2 = vcmp.eq.s32.totalorder %v1400_v39, %v1407_v48 }
  0xd5   :  { %v159_v60 = vadd.f32 %v894_v57, %v145_v56  ;;  %v895_v21 = vsel %vm154_vm2, 1.0, %v1279_v51  ;;  %v506_v56 = vld [vmem:[#allocation8 + $0x68] sm:$0xff] }
  0xd6   :  { %v160_v29 = vadd.f32 %v895_v21, %v146_v23  ;;  %v635_v21 = vld [vmem:[#allocation10 + $0xe0] sm:$0xff]  ;;  %v633_v23 = vld [vmem:[#allocation10 + $0xd0] sm:$0xff] }
  0xd7   :  { %v323_v35 = vpop.permute.xlu1 %322  ;;  %v163_v41 = vpop.permute.xlu0 %162 }
  0xd8   :  { %vm167_vm3 = vcmp.eq.s32.totalorder %v163_v41, %v1407_v48  ;;  %vm327_vm7 = vcmp.eq.s32.totalorder %v323_v35, %v1407_v48 }
  0xd9   :  { %v896_v59 = vsel %vm167_vm3, 1.0, %v1279_v51  ;;  %v908_v3 = vsel %vm327_vm7, 1.0, %v1279_v51 }
  0xda   :  { %v173_v0 = vadd.f32 %v896_v59, %v159_v60  ;;  %v505_v59 = vld [vmem:[#allocation8 + $0x60] sm:$0xff]  ;;  %v520_v60 = vld [vmem:[#allocation8 + $0xd8] sm:$0xff] }
  0xdb   :  { %v1402_v43 = vpop.permute.xlu0 %165 }
  0xdc   :  { %v337_v37 = vpop.permute.xlu1 %336  ;;  %vm168_vm3 = vcmp.eq.s32.totalorder %v1402_v43, %v1407_v48 }
  0xdd   :  { %vm341_vm5 = vcmp.eq.s32.totalorder %v337_v37, %v1407_v48  ;;  %v897_v26 = vsel %vm168_vm3, 1.0, %v1279_v51 }
  0xde   :  { %v910_v1 = vsel %vm341_vm5, 1.0, %v1279_v51  ;;  %v174_v34 = vadd.f32 %v897_v26, %v160_v29  ;;  %v630_v26 = vld [vmem:[#allocation10 + $0xb8] sm:$0xff]  ;;  %v627_v29 = vld [vmem:[#allocation10 + $0xa0] sm:$0xff] }
  0xdf   :  { %v347_v5 = vadd.f32 %v910_v1, %v908_v3  ;;  %v501_v1 = vld [vmem:[#allocation8 + $0x40] sm:$0xff]  ;;  %v500_v3 = vld [vmem:[#allocation8 + $0x38] sm:$0xff] }
  0xe0   :  { %v177_v46 = vpop.permute.xlu0 %176 }
  0xe1   :  { %v1398_v38 = vpop.permute.xlu1 %325  ;;  %vm181_vm4 = vcmp.eq.s32.totalorder %v177_v46, %v1407_v48  ;;  %v508_v46 = vld [vmem:[#allocation8 + $0x78] sm:$0xff] }
  0xe2   :  { %v898_v62 = vsel %vm181_vm4, 1.0, %v1279_v51  ;;  %vm328_vm14 = vcmp.eq.s32.totalorder %v1398_v38, %v1407_v48 }
  0xe3   :  { %v187_v4 = vadd.f32 %v898_v62, %v173_v0  ;;  %v909_v16 = vsel %vm328_vm14, 1.0, %v1279_v51  ;;  %v519_v62 = vld [vmem:[#allocation8 + $0xd0] sm:$0xff]  ;;  %v517_v0 = vld [vmem:[#allocation8 + $0xc0] sm:$0xff] }
  0xe5   :  { %v365_v49 = vpop.permute.xlu0 %364 }
  0xe6   :  { %v340_v40 = vpop.permute.xlu1 %339  ;;  %vm369_vm0 = vcmp.eq.s32.totalorder %v365_v49, %v1407_v48  ;;  %v523_v49 = vld [vmem:[#allocation8 + $0xf0] sm:$0xff] }
  0xe7   :  { %vm342_vm13 = vcmp.eq.s32.totalorder %v340_v40, %v1407_v48  ;;  %v914_v17 = vsel %vm369_vm0, 1.0, %v1279_v51 }
  0xe8   :  { %v911_v12 = vsel %vm342_vm13, 1.0, %v1279_v51 }
  0xe9   :  { %v348_v22 = vadd.f32 %v911_v12, %v909_v16  ;;  %v511_v12 = vld [vmem:[#allocation8 + $0x90] sm:$0xff]  ;;  %v509_v16 = vld [vmem:[#allocation8 + $0x80] sm:$0xff] }
  0xea   :  { %v1413_v54 = vpop.permute.xlu0 %193 }
  0xeb   :  { %v351_v42 = vpop.permute.xlu1 %350  ;;  %vm196_vm11 = vcmp.eq.s32.totalorder %v1413_v54, %v1407_v48  ;;  %v522_v54 = vld [vmem:[#allocation8 + $0xe8] sm:$0xff] }
  0xec   :  { %vm355_vm8 = vcmp.eq.s32.totalorder %v351_v42, %v1407_v48  ;;  %v901_v40 = vsel %vm196_vm11, 1.0, %v1279_v51 }
  0xed   :  { %v912_v7 = vsel %vm355_vm8, 1.0, %v1279_v51  ;;  %vm411_vm8 = vcmask 392192  }
  0xee   :  { %v361_v14 = vadd.f32 %v912_v7, %v347_v5  ;;  %v499_v5 = vld [vmem:[#allocation8 + $0x30] sm:$0xff]  ;;  %v498_v7 = vld [vmem:[#allocation8 + $0x28] sm:$0xff] }
  0xef   :  { %v354_v44 = vpop.permute.xlu1 %353  ;;  %v1418_v58 = vpop.permute.xlu0 %381 }
  0xf0   :  { %vm356_vm1 = vcmp.eq.s32.totalorder %v354_v44, %v1407_v48  ;;  %v375_v27 = vadd.f32 %v914_v17, %v361_v14  ;;  %vm384_vm7 = vcmp.eq.s32.totalorder %v1418_v58, %v1407_v48  ;;  %v521_v58 = vld [vmem:[#allocation8 + $0xe0] sm:$0xff]  ;;  %v510_v14 = vld [vmem:[#allocation8 + $0x88] sm:$0xff] }
  0xf1   :  { %v913_v18 = vsel %vm356_vm1, 1.0, %v1279_v51  ;;  %v917_v35 = vsel %vm384_vm7, 1.0, %v1279_v51  ;;  %v493_v17 = vld [vmem:[#allocation8] sm:$0xff] }
  0xf2   :  { %v362_v28 = vadd.f32 %v913_v18, %v348_v22  ;;  %v638_v18 = vld [vmem:[#allocation10 + $0xf8] sm:$0xff] }
  0xf3   :  { %683 = vmatprep.subr.mxu0 %v638_v18  ;;  %v634_v22 = vld [vmem:[#allocation10 + $0xd8] sm:$0xff]  ;;  %v643_v18 = vld [vmem:[#allocation10 + $0x120] sm:$0xff] }
  0xf4   :  { %v1404_v47 = vpop.permute.xlu1 %179  ;;  %v219_v63 = vpop.permute.xlu0 %218 }
  0xf5   :  { %vm223_vm9 = vcmp.eq.s32.totalorder %v219_v63, %v1407_v48  ;;  %v518_v63 = vld [vmem:[#allocation8 + $0xc8] sm:$0xff] }
  0xf6   :  { %v904_v10 = vsel %vm223_vm9, 1.0, %v1279_v51 }
  0xf9   :  { %v191_v50 = vpop.permute.xlu1 %190 }
  0xfa   :  { %vm195_vm6 = vcmp.eq.s32.totalorder %v191_v50, %v1407_v48 }
  0xfb   :  { %v900_v2 = vsel %vm195_vm6, 1.0, %v1279_v51  ;;  %vm182_vm6 = vcmp.eq.s32.totalorder %v1404_v47, %v1407_v48 }
  0xfc   :  { %v201_v8 = vadd.f32 %v900_v2, %v187_v4  ;;  %v899_v31 = vsel %vm182_vm6, 1.0, %v1279_v51  ;;  %v516_v2 = vld [vmem:[#allocation8 + $0xb8] sm:$0xff]  ;;  %v515_v4 = vld [vmem:[#allocation8 + $0xb0] sm:$0xff] }
  0xfd   :  { %v188_v38 = vadd.f32 %v899_v31, %v174_v34  ;;  %v625_v31 = vld [vmem:[#allocation10 + $0x90] sm:$0xff]  ;;  %v622_v34 = vld [vmem:[#allocation10 + $0x78] sm:$0xff] }
  0xfe   :  { %v368_v55 = vpop.permute.xlu1 %367 }
  0xff   :  { %vm370_vm4 = vcmp.eq.s32.totalorder %v368_v55, %v1407_v48  ;;  %v202_v47 = vadd.f32 %v901_v40, %v188_v38  ;;  %v618_v38 = vld [vmem:[#allocation10 + $0x58] sm:$0xff]  ;;  %v616_v40 = vld [vmem:[#allocation10 + $0x48] sm:$0xff] }
 0x100   :  { %v915_v24 = vsel %vm370_vm4, 1.0, %v1279_v51 }
 0x101   :  { %v376_v32 = vadd.f32 %v915_v24, %v362_v28  ;;  %v632_v24 = vld [vmem:[#allocation10 + $0xc8] sm:$0xff] }
 0x102   :  { %v628_v28 = vld [vmem:[#allocation10 + $0xa8] sm:$0xff] }
 0x103   :  { %v379_v61 = vpop.permute.xlu1 %378  ;;  %v390_v41 = vadd.f32 %v917_v35, %v376_v32  ;;  %v624_v32 = vld [vmem:[#allocation10 + $0x88] sm:$0xff]  ;;  %v621_v35 = vld [vmem:[#allocation10 + $0x70] sm:$0xff] }
 0x104   :  { %vm383_vm5 = vcmp.eq.s32.totalorder %v379_v61, %v1407_v48  ;;  %v504_v61 = vld [vmem:[#allocation8 + $0x58] sm:$0xff] }
 0x105   :  { %v916_v25 = vsel %vm383_vm5, 1.0, %v1279_v51 }
 0x106   :  { %v389_v33 = vadd.f32 %v916_v25, %v375_v27  ;;  %v631_v25 = vld [vmem:[#allocation10 + $0xc0] sm:$0xff]  ;;  %v629_v27 = vld [vmem:[#allocation10 + $0xb0] sm:$0xff] }
 0x108   :  { %v205_v6 = vpop.permute.xlu1 %204 }
 0x109   :  { %vm209_vm15 = vcmp.eq.s32.totalorder %v205_v6, %v1407_v48  ;;  %v514_v6 = vld [vmem:[#allocation8 + $0xa8] sm:$0xff] }
 0x10a   :  { %v902_v9 = vsel %vm209_vm15, 1.0, %v1279_v51 }
 0x10b   :  { %v215_v13 = vadd.f32 %v902_v9, %v201_v8  ;;  %v513_v8 = vld [vmem:[#allocation8 + $0xa0] sm:$0xff] }
 0x10c   :  { %v208_v15 = vpop.permute.xlu1 %207  ;;  %v497_v9 = vld [vmem:[#allocation8 + $0x20] sm:$0xff] }
 0x10d   :  { %v229_v19 = vadd.f32 %v904_v10, %v215_v13  ;;  %vm210_vm12 = vcmp.eq.s32.totalorder %v208_v15, %v1407_v48  ;;  %v512_v10 = vld [vmem:[#allocation8 + $0x98] sm:$0xff]  ;;  %v495_v13 = vld [vmem:[#allocation8 + $0x10] sm:$0xff]  ;;  %v494_v15 = vld [vmem:[#allocation8 + $0x8] sm:$0xff] }
 0x10e   :  { %v903_v43 = vsel %vm210_vm12, 1.0, %v1279_v51 }
 0x10f   :  { %1032 = vmatprep.mubr.msk.f32.mxu0 %vm239_vm10, %v229_v19  ;;  %v216_v53 = vadd.f32 %v903_v43, %v202_v47  ;;  %v637_v19 = vld [vmem:[#allocation10 + $0xf0] sm:$0xff]  ;;  %v610_v47 = vld [vmem:[#allocation10 + $0x18] sm:$0xff] }
 0x110   :  { %v613_v43 = vld [vmem:[#allocation10 + $0x30] sm:$0xff] }
 0x111   :  { %v393_v30 = vpop.permute.xlu1 %392 }
 0x112   :  { %vm397_vm9 = vcmp.eq.s32.totalorder %v393_v30, %v1407_v48  ;;  %v626_v30 = vld [vmem:[#allocation10 + $0x98] sm:$0xff] }
 0x113   :  { %v918_v36 = vsel %vm397_vm9, 1.0, %v1279_v51 }
 0x114   :  { %v403_v37 = vadd.f32 %v918_v36, %v389_v33  ;;  %v623_v33 = vld [vmem:[#allocation10 + $0x80] sm:$0xff]  ;;  %v620_v36 = vld [vmem:[#allocation10 + $0x68] sm:$0xff] }
 0x115   :  { %v396_v39 = vpop.permute.xlu1 %395 }
 0x116   :  { %vm398_vm13 = vcmp.eq.s32.totalorder %v396_v39, %v1407_v48  ;;  %1047 = vmatprep.mubr.msk.f32.mxu1 %vm411_vm8, %v403_v37  ;;  %v619_v37 = vld [vmem:[#allocation10 + $0x60] sm:$0xff]  ;;  %v617_v39 = vld [vmem:[#allocation10 + $0x50] sm:$0xff] }
 0x117   :  { %v919_v42 = vsel %vm398_vm13, 1.0, %v1279_v51 }
 0x118   :  { %v404_v44 = vadd.f32 %v919_v42, %v390_v41  ;;  %v615_v41 = vld [vmem:[#allocation10 + $0x40] sm:$0xff]  ;;  %v614_v42 = vld [vmem:[#allocation10 + $0x38] sm:$0xff] }
 0x11a   :  { %v222_v50 = vpop.permute.xlu1 %221  ;;  %1048 = vmatmul.mubr.msk.f32.vlgmr.msra.gmra.mxu1 %vm411_vm8, %v404_v44  ;;  %v612_v44 = vld [vmem:[#allocation10 + $0x28] sm:$0xff] }
 0x11b   :  { %vm224_vm14 = vcmp.eq.s32.totalorder %v222_v50, %v1407_v48  ;;  %944 = vmatpush3.msra.mxu1 %v508_v46  ;;  %v503_v48 = vld [vmem:[#allocation8 + $0x50] sm:$0xff]  ;;  %v611_v46 = vld [vmem:[#allocation10 + $0x20] sm:$0xff]  ;;  %v608_v50 = vld [vmem:[#allocation10 + $0x8] sm:$0xff] }
 0x11c   :  { %v905_v55 = vsel %vm224_vm14, 1.0, %v1279_v51  ;;  %945 = vmatprep.subr.mxu1 %v523_v49  ;;  %v502_v51 = vld [vmem:[#allocation8 + $0x48] sm:$0xff]  ;;  %v609_v49 = vld [vmem:[#allocation10 + $0x10] sm:$0xff] }
 0x11d   :  { %v230_v57 = vadd.f32 %v905_v55, %v216_v53  ;;  %946 = vmatpush3.msra.mxu1 %v507_v52  ;;  %v607_v52 = vld [vmem:[#allocation10] sm:$0xff]  ;;  %v670_v53 = vld [vmem:[#allocation10 + $0x1f8] sm:$0xff]  ;;  %v668_v55 = vld [vmem:[#allocation10 + $0x1e8] sm:$0xff] }
 0x11e   :  { %947 = vmatprep.subr.mxu1 %v522_v54  ;;  %v669_v54 = vld [vmem:[#allocation10 + $0x1f0] sm:$0xff] }
 0x11f   :  { %1033 = vmatmul.mubr.msk.f32.vlgmr.msra.gmra.mxu0 %vm239_vm10, %v230_v57  ;;  %948 = vmatpush3.msra.mxu1 %v506_v56  ;;  %v667_v56 = vld [vmem:[#allocation10 + $0x1e0] sm:$0xff]  ;;  %v666_v57 = vld [vmem:[#allocation10 + $0x1d8] sm:$0xff] }
 0x120   :  { %949 = vmatprep.subr.mxu1 %v521_v58  ;;  %684 = vmatpush1.msra.mxu0 %v637_v19  ;;  %v665_v58 = vld [vmem:[#allocation10 + $0x1d0] sm:$0xff]  ;;  %v642_v19 = vld [vmem:[#allocation10 + $0x118] sm:$0xff] }
 0x121   :  { %950 = vmatpush3.msra.mxu1 %v505_v59  ;;  %685 = vmatprep.subr.mxu0 %v636_v20  ;;  %v664_v59 = vld [vmem:[#allocation10 + $0x1c8] sm:$0xff]  ;;  %v641_v20 = vld [vmem:[#allocation10 + $0x110] sm:$0xff] }
 0x122   :  { %951 = vmatprep.subr.mxu1 %v520_v60  ;;  %686 = vmatpush1.msra.mxu0 %v635_v21  ;;  %v663_v60 = vld [vmem:[#allocation10 + $0x1c0] sm:$0xff]  ;;  %v640_v21 = vld [vmem:[#allocation10 + $0x108] sm:$0xff] }
 0x123   :  { %952 = vmatpush3.msra.mxu1 %v504_v61  ;;  %687 = vmatprep.subr.mxu0 %v634_v22  ;;  %v662_v61 = vld [vmem:[#allocation10 + $0x1b8] sm:$0xff]  ;;  %v639_v22 = vld [vmem:[#allocation10 + $0x100] sm:$0xff] }
 0x124   :  { %953 = vmatprep.subr.mxu1 %v519_v62  ;;  %688 = vmatpush1.msra.mxu0 %v633_v23  ;;  %v661_v62 = vld [vmem:[#allocation10 + $0x1b0] sm:$0xff]  ;;  %v787_v23 = vld [vmem:[#allocation11 + $0xf8] sm:$0xff] }
 0x125   :  { %954 = vmatpush3.msra.mxu1 %v503_v48  ;;  %689 = vmatprep.subr.mxu0 %v632_v24  ;;  %v660_v48 = vld [vmem:[#allocation10 + $0x1a8] sm:$0xff]  ;;  %v771_v24 = vld [vmem:[#allocation11 + $0x78] sm:$0xff] }
 0x126   :  { %955 = vmatprep.subr.mxu1 %v518_v63  ;;  %690 = vmatpush1.msra.mxu0 %v631_v25  ;;  %v659_v63 = vld [vmem:[#allocation10 + $0x1a0] sm:$0xff]  ;;  %v786_v25 = vld [vmem:[#allocation11 + $0xf0] sm:$0xff] }
 0x127   :  { %956 = vmatpush3.msra.mxu1 %v502_v51  ;;  %691 = vmatprep.subr.mxu0 %v630_v26  ;;  %v658_v51 = vld [vmem:[#allocation10 + $0x198] sm:$0xff]  ;;  %v770_v26 = vld [vmem:[#allocation11 + $0x70] sm:$0xff] }
 0x128   :  { %957 = vmatprep.subr.mxu1 %v517_v0  ;;  %692 = vmatpush1.msra.mxu0 %v629_v27  ;;  %v657_v0 = vld [vmem:[#allocation10 + $0x190] sm:$0xff]  ;;  %v785_v27 = vld [vmem:[#allocation11 + $0xe8] sm:$0xff] }
 0x129   :  { %958 = vmatpush3.msra.mxu1 %v501_v1  ;;  %693 = vmatprep.subr.mxu0 %v628_v28  ;;  %v656_v1 = vld [vmem:[#allocation10 + $0x188] sm:$0xff] }
 0x12a   :  { %959 = vmatprep.subr.mxu1 %v516_v2  ;;  %694 = vmatpush1.msra.mxu0 %v627_v29  ;;  %v655_v2 = vld [vmem:[#allocation10 + $0x180] sm:$0xff]  ;;  %v769_v28 = vld [vmem:[#allocation11 + $0x68] sm:$0xff] }
 0x12b   :  { %960 = vmatpush3.msra.mxu1 %v500_v3  ;;  %695 = vmatprep.subr.mxu0 %v626_v30  ;;  %v654_v3 = vld [vmem:[#allocation10 + $0x178] sm:$0xff]  ;;  %v784_v29 = vld [vmem:[#allocation11 + $0xe0] sm:$0xff] }
 0x12c   :  { %961 = vmatprep.subr.mxu1 %v515_v4  ;;  %696 = vmatpush1.msra.mxu0 %v625_v31  ;;  %v653_v4 = vld [vmem:[#allocation10 + $0x170] sm:$0xff]  ;;  %v768_v30 = vld [vmem:[#allocation11 + $0x60] sm:$0xff]  ;;  %v783_v31 = vld [vmem:[#allocation11 + $0xd8] sm:$0xff] }
 0x12d   :  { %962 = vmatpush3.msra.mxu1 %v499_v5  ;;  %697 = vmatprep.subr.mxu0 %v624_v32  ;;  %v652_v5 = vld [vmem:[#allocation10 + $0x168] sm:$0xff]  ;;  %v767_v32 = vld [vmem:[#allocation11 + $0x58] sm:$0xff] }
 0x12e   :  { %963 = vmatprep.subr.mxu1 %v514_v6  ;;  %698 = vmatpush1.msra.mxu0 %v623_v33  ;;  %v651_v6 = vld [vmem:[#allocation10 + $0x160] sm:$0xff]  ;;  %v782_v33 = vld [vmem:[#allocation11 + $0xd0] sm:$0xff] }
 0x12f   :  { %964 = vmatpush3.msra.mxu1 %v498_v7  ;;  %699 = vmatprep.subr.mxu0 %v622_v34  ;;  %v766_v34 = vld [vmem:[#allocation11 + $0x50] sm:$0xff] }
 0x130   :  { %965 = vmatprep.subr.mxu1 %v513_v8  ;;  %700 = vmatpush1.msra.mxu0 %v621_v35  ;;  %v781_v35 = vld [vmem:[#allocation11 + $0xc8] sm:$0xff] }
 0x131   :  { %966 = vmatpush3.msra.mxu1 %v497_v9  ;;  %701 = vmatprep.subr.mxu0 %v620_v36  ;;  %v765_v36 = vld [vmem:[#allocation11 + $0x48] sm:$0xff] }
 0x132   :  { %967 = vmatprep.subr.mxu1 %v512_v10  ;;  %702 = vmatpush1.msra.mxu0 %v619_v37  ;;  %v780_v37 = vld [vmem:[#allocation11 + $0xc0] sm:$0xff] }
 0x133   :  { %968 = vmatpush3.msra.mxu1 %v496_v11  ;;  %703 = vmatprep.subr.mxu0 %v618_v38  ;;  %v650_v11 = vld [vmem:[#allocation10 + $0x158] sm:$0xff]  ;;  %v764_v38 = vld [vmem:[#allocation11 + $0x40] sm:$0xff] }
 0x134   :  { %969 = vmatprep.subr.mxu1 %v511_v12  ;;  %704 = vmatpush1.msra.mxu0 %v617_v39  ;;  %v649_v12 = vld [vmem:[#allocation10 + $0x150] sm:$0xff]  ;;  %v779_v39 = vld [vmem:[#allocation11 + $0xb8] sm:$0xff] }
 0x135   :  { %970 = vmatpush3.msra.mxu1 %v495_v13  ;;  %705 = vmatprep.subr.mxu0 %v616_v40  ;;  %v648_v13 = vld [vmem:[#allocation10 + $0x148] sm:$0xff]  ;;  %v763_v40 = vld [vmem:[#allocation11 + $0x38] sm:$0xff] }
 0x136   :  { %971 = vmatprep.subr.mxu1 %v510_v14  ;;  %706 = vmatpush1.msra.mxu0 %v615_v41  ;;  %v647_v14 = vld [vmem:[#allocation10 + $0x140] sm:$0xff]  ;;  %v778_v41 = vld [vmem:[#allocation11 + $0xb0] sm:$0xff] }
 0x137   :  { %972 = vmatpush3.msra.mxu1 %v494_v15  ;;  %707 = vmatprep.subr.mxu0 %v614_v42  ;;  %v646_v15 = vld [vmem:[#allocation10 + $0x138] sm:$0xff]  ;;  %v762_v42 = vld [vmem:[#allocation11 + $0x30] sm:$0xff] }
 0x138   :  { %973 = vmatprep.subr.mxu1 %v509_v16  ;;  %708 = vmatpush1.msra.mxu0 %v613_v43  ;;  %v645_v16 = vld [vmem:[#allocation10 + $0x130] sm:$0xff]  ;;  %v777_v43 = vld [vmem:[#allocation11 + $0xa8] sm:$0xff] }
 0x139   :  { %974 = vmatpush3.msra.mxu1 %v493_v17  ;;  %709 = vmatprep.subr.mxu0 %v612_v44  ;;  %v644_v17 = vld [vmem:[#allocation10 + $0x128] sm:$0xff] }
 0x13a   :  { %710 = vmatpush1.msra.mxu0 %v611_v46  ;;  %981 = vmatprep.subr.mxu1 %v787_v23  ;;  %v761_v44 = vld [vmem:[#allocation11 + $0x28] sm:$0xff]  ;;  %v776_v46 = vld [vmem:[#allocation11 + $0xa0] sm:$0xff] }
 0x13b   :  { %711 = vmatprep.subr.mxu0 %v610_v47  ;;  %v760_v47 = vld [vmem:[#allocation11 + $0x20] sm:$0xff] }
 0x13c   :  { %712 = vmatpush1.msra.mxu0 %v609_v49 }
 0x13d   :  { %713 = vmatprep.subr.mxu0 %v608_v50 }
 0x13e   :  { %714 = vmatpush1.msra.mxu0 %v607_v52 }
 0x13f   :  { %715 = vmatprep.subr.mxu0 %v670_v53 }
 0x140   :  { %716 = vmatpush2.msra.mxu0 %v669_v54 }
 0x141   :  { %717 = vmatprep.subr.mxu0 %v668_v55  ;;  %v922_v55 = vld [vmem:[%s1506_s4] ss:$0 sm:$0xff] }
 0x142   :  { %718 = vmatpush2.msra.mxu0 %v667_v56 }
 0x143   :  { %719 = vmatprep.subr.mxu0 %v666_v57 }
 0x144   :  { %720 = vmatpush2.msra.mxu0 %v665_v58 }
 0x145   :  { %721 = vmatprep.subr.mxu0 %v664_v59  ;;  %v775_v59 = vld [vmem:[#allocation11 + $0x98] sm:$0xff] }
 0x146   :  { %722 = vmatpush2.msra.mxu0 %v663_v60  ;;  %v759_v60 = vld [vmem:[#allocation11 + $0x18] sm:$0xff] }
 0x147   :  { %723 = vmatprep.subr.mxu0 %v662_v61  ;;  %v774_v61 = vld [vmem:[#allocation11 + $0x90] sm:$0xff] }
 0x148   :  { %724 = vmatpush2.msra.mxu0 %v661_v62  ;;  %v758_v62 = vld [vmem:[#allocation11 + $0x10] sm:$0xff] }
 0x149   :  { %725 = vmatprep.subr.mxu0 %v660_v48  ;;  %v773_v48 = vld [vmem:[#allocation11 + $0x88] sm:$0xff] }
 0x14a   :  { %726 = vmatpush2.msra.mxu0 %v659_v63  ;;  %v757_v63 = vld [vmem:[#allocation11 + $0x8] sm:$0xff] }
 0x14b   :  { %727 = vmatprep.subr.mxu0 %v658_v51  ;;  %v772_v51 = vld [vmem:[#allocation11 + $0x80] sm:$0xff] }
 0x14c   :  { %728 = vmatpush2.msra.mxu0 %v657_v0  ;;  %v756_v0 = vld [vmem:[#allocation11] sm:$0xff] }
 0x14d   :  { %729 = vmatprep.subr.mxu0 %v656_v1  ;;  %v674_v1 = vshrl.u32 %v117_v45, 7  ;;  %v923_v45 = vld [vmem:[%s1510_s8] ss:$0 sm:$0xff] }
 0x14e   :  { %730 = vmatpush2.msra.mxu0 %v655_v2 }
 0x14f   :  { %731 = vmatprep.subr.mxu0 %v654_v3  ;;  %v675_v2 = vsub.s32 0, %v674_v1  ;;  %v671_v3 = vld [vmem:[%s1508_s6] sm:$0x3]  ;;  %s1280_s6 = smov [#allocation13]  }
 0x150   :  { %732 = vmatpush2.msra.mxu0 %v653_v4  ;;  %v679_v4 = vsub.s32 1, %v674_v1  ;;  %s878_s21 = sshll.u32 %s1280_s6, 4  ;;  %s879_s21 = int_to_ptr.vmem [resolvable:$true] %s878_s21 }
 0x151   :  { %733 = vmatprep.subr.mxu0 %v652_v5  ;;  %v676_v5 = vrot.slane %v671_v3, %v675_v2  ;;  %s1225_s22 = scalar_lea.vmem %s879_s21, 128  ;;  %p1230_p3 = scmp.lt.s32.totalorder %s879_s21, %s879_s21 }
 0x152   :  { %734 = vmatpush2.msra.mxu0 %v651_v6  ;;  %v680_v6 = vrot.slane %v671_v3, %v679_v4  ;;  %p1226_p2 = scmp.ne.s32.totalorder %s879_s21, %s1225_s22  ;;  %p1231_p4 = scmp.lt.s32.totalorder %s1225_s22, %s1225_s22 }
 0x153   :  { %735 = vmatprep.subr.mxu0 %v650_v11 }
 0x154   :  { %736 = vmatpush2.msra.mxu0 %v649_v12  ;;  %p1232_p5 = por %p1231_p4, %p1230_p3 }
 0x155   :  { %737 = vmatprep.subr.mxu0 %v648_v13 }
 0x156   :  { %738 = vmatpush2.msra.mxu0 %v647_v14  ;;  %p1233_p6 = pnand %p1232_p5, %p1226_p2 }
 0x157   :  { %739 = vmatprep.subr.mxu0 %v646_v15 }
 0x158   :  { %740 = vmatpush2.msra.mxu0 %v645_v16 }
 0x159   :  { %741 = vmatprep.subr.mxu0 %v644_v17 }
 0x15a   :  { %742 = vmatpush2.msra.mxu0 %v643_v18 }
 0x15b   :  { %743 = vmatprep.subr.mxu0 %v642_v19 }
 0x15c   :  { %744 = vmatpush2.msra.mxu0 %v641_v20 }
 0x15d   :  { %745 = vmatprep.subr.mxu0 %v640_v21 }
 0x15e   :  { %746 = vmatpush2.msra.mxu0 %v639_v22 }
 0x1da   :  { %v1049_v7 = vpop.f32.mrf.mxu1 }
 0x1dc   :  { %v484_v8 = vpop.f32.mrf.mxu1 }
 0x1dd   :  { %596 = vmatprep.mubr.f32.mxu1 %v484_v8 }
 0x1df   :  { %v1034_v9 = vpop.f32.mrf.mxu0 }
 0x1e1   :  { %v312_v10 = vpop.f32.mrf.mxu0 }
 0x1e2   :  { %597 = vmatmul.mubr.f32.vlgmr.msra.gmra.mxu1 %v312_v10 }
 0x1e3   :  { %601 = vmatprep.mubr.f32.mxu1 %v1049_v7  ;;  %982 = vmatpush3.msra.mxu1 %v771_v24 }
 0x1e4   :  { %983 = vmatprep.subr.mxu1 %v786_v25 }
 0x1e5   :  { %984 = vmatpush3.msra.mxu1 %v770_v26 }
 0x1e6   :  { %602 = vmatmul.mubr.f32.gmra.mxu1 %v1034_v9  ;;  %985 = vmatprep.subr.mxu1 %v785_v27 }
 0x1e7   :  { %986 = vmatpush3.msra.mxu1 %v769_v28 }
 0x1e8   :  { %987 = vmatprep.subr.mxu1 %v784_v29 }
 0x1e9   :  { %988 = vmatpush3.msra.mxu1 %v768_v30 }
 0x1ea   :  { %989 = vmatprep.subr.mxu1 %v783_v31 }
 0x1eb   :  { %990 = vmatpush3.msra.mxu1 %v767_v32 }
 0x1ec   :  { %991 = vmatprep.subr.mxu1 %v782_v33 }
 0x1ed   :  { %992 = vmatpush3.msra.mxu1 %v766_v34 }
 0x1ee   :  { %993 = vmatprep.subr.mxu1 %v781_v35 }
 0x1ef   :  { %994 = vmatpush3.msra.mxu1 %v765_v36 }
 0x1f0   :  { %995 = vmatprep.subr.mxu1 %v780_v37 }
 0x1f1   :  { %996 = vmatpush3.msra.mxu1 %v764_v38 }
 0x1f2   :  { %997 = vmatprep.subr.mxu1 %v779_v39 }
 0x1f3   :  { %998 = vmatpush3.msra.mxu1 %v763_v40 }
 0x1f4   :  { %999 = vmatprep.subr.mxu1 %v778_v41 }
 0x1f5   :  { %1000 = vmatpush3.msra.mxu1 %v762_v42 }
 0x1f6   :  { %1001 = vmatprep.subr.mxu1 %v777_v43 }
 0x1f7   :  { %1002 = vmatpush3.msra.mxu1 %v761_v44 }
 0x1f8   :  { %1003 = vmatprep.subr.mxu1 %v776_v46 }
 0x1f9   :  { %1004 = vmatpush3.msra.mxu1 %v760_v47 }
 0x1fa   :  { %1005 = vmatprep.subr.mxu1 %v775_v59 }
 0x1fb   :  { %1006 = vmatpush3.msra.mxu1 %v759_v60 }
 0x1fc   :  { %1007 = vmatprep.subr.mxu1 %v774_v61 }
 0x1fd   :  { %1008 = vmatpush3.msra.mxu1 %v758_v62 }
 0x1fe   :  { %1009 = vmatprep.subr.mxu1 %v773_v48 }
 0x1ff   :  { %1010 = vmatpush3.msra.mxu1 %v757_v63 }
 0x200   :  { %1011 = vmatprep.subr.mxu1 %v772_v51 }
 0x201   :  { %1012 = vmatpush3.msra.mxu1 %v756_v0 }
 0x2a2   :  { %v975_v49 = vpop.f32.mrf.mxu1 }
 0x2a4   :  { %v976_v50 = vpop.f32.mrf.mxu1 }
 0x2a5   :  { %v977_v53 = vadd.f32 %v976_v50, %v975_v49 }
 0x2a6   :  { %v978_v52 = vpop.f32.mrf.mxu1 }
 0x2a7   :  { %v599_v58 = vadd.f32 %v977_v53, %v922_v55 }
 0x2a8   :  { %v979_v54 = vpop.f32.mrf.mxu1 }
 0x2a9   :  { %v980_v56 = vadd.f32 %v979_v54, %v978_v52 }
 0x2ab   :  { %v604_v57 = vadd.f32 %v980_v56, %v922_v55 }
 0x2ad   :  { %747 = vmatprep.mubr.f32.mxu0 %v604_v57 }
 0x2ae   :  { %748 = vmatmul.mubr.f32.vlgmr.msra.gmra.mxu0 %v599_v58 }
 0x36e   :  { %v749_v7 = vpop.f32.mrf.mxu0 }
 0x36f   :  { %v750_v8 = vadd.f32 %v749_v7, %v676_v5 }
 0x370   :  { %v751_v9 = vpop.f32.mrf.mxu0 }
 0x371   :  { %v752_v10 = vadd.f32 %v751_v9, %v680_v6  ;;  %v754_v12 = vmax.f32 %v750_v8, 0.0 }
 0x373   :  { %v755_v11 = vmax.f32 %v752_v10, 0.0 }
 0x375   :  { %859 = vmatprep.mubr.f32.mxu1 %v755_v11 }
 0x376   :  { %860 = vmatmul.mubr.f32.vlgmr.msra.gmra.mxu1 %v754_v12 }
 0x436   :  { %v1013_v13 = vpop.f32.mrf.mxu1 }
 0x438   :  { %v1014_v14 = vpop.f32.mrf.mxu1 }
 0x439   :  { %v1015_v15 = vadd.f32 %v1014_v14, %v1013_v13 }
 0x43b   :  { %v862_v16 = vadd.f32 %v1015_v15, %v923_v45 }
 0x43d   :  { %v924_v17 = vmul.f32 -1.442695, %v862_v16 }
 0x43f   :  { %1101 = vpow2.f32 %v924_v17 }
 0x44c   :  { %v1102_v18 = vpop.eup %1101 }
 0x44d   :  { %v868_v19 = vadd.f32 1.0, %v1102_v18 }
 0x44f   :  { %1103 = vrcp.f32 %v868_v19 }
 0x45c   :  { %v1104_v20 = vpop.eup %1103 }
 0x45d   :  { %871 = vst [vmem:[#allocation13] sm:$0xff] %v1104_v20 }
 0x45e   :  { %1236 = shalt.err (!%p1233_p6)
}
 0x45f   :  { %881 = dma.vmem_to_hbm [thread:$0]  %s879_s21, 128, %s1511_s9, [#allocation4]  }
 0x460   :  { %1253 = dma.done.wait [#allocation4], 128  }
 0x461   :  { %1254 = vsyncadd [#allocation4], 4294967168 }
 0x462   :  { %885 = vsyncpa [#allocation3], 1 }
 0x463   :  { %886 = vsyncpa [#allocation6], 1 }
 0x464   :  { %887 = vsyncpa [#allocation9], 1 }
 0x465   :  { %888 = vsyncpa [#allocation12], 1 }
 0x466   :  { %889 = vsyncpa [#allocation4], 1 }

</bundles_post_ra>
